<compile_context>
chip_gen: v7x
topology: tpu7x:2x2x1
jax: 0.10.0
libtpu: 0.0.40
codegen_flags: <defaults>
</compile_context>

<pallas_src>
import functools

import numpy as np
import jax
import jax.numpy as jnp
from jax import lax
from jax.experimental import pallas as pl
from jax.experimental.pallas import tpu as pltpu


# Tap order t = (oy+1)*3 + (ox+1) == ky*3 + kx (matches the weight reshape below).
_TAPS = tuple((oy, ox) for oy in (-1, 0, 1) for ox in (-1, 0, 1))
_BN_EPS = 1e-5


def _round_up8(c):
    return ((c + 7) // 8) * 8


def _make_tap_masks(n, h, w):
    """(9, 1, n*h*w) f32 validity masks for the 9 conv taps (static, built on host)."""
    yy, xx = np.meshgrid(np.arange(h), np.arange(w), indexing="ij")
    masks = np.zeros((9, 1, n * h * w), np.float32)
    for t, (oy, ox) in enumerate(_TAPS):
        valid = ((yy + oy >= 0) & (yy + oy < h) &
                 (xx + ox >= 0) & (xx + ox < w)).astype(np.float32)     # (h, w)
        masks[t, 0, :] = np.tile(valid.reshape(-1), n)
    return jnp.asarray(masks)


# ----------------------------------------------------------------------------
# Fused kernel: conv1 -> bn1 -> relu -> conv2 -> bn2 -> relu -> conv3 -> bn3 -> relu
# ----------------------------------------------------------------------------
def _share_feature_kernel(x_ref, masks_ref,
                          w1_ref, g1_ref, b1_ref,
                          w2_ref, g2_ref, b2_ref,
                          w3_ref, g3_ref, b3_ref,
                          o_ref, *, width, nhw):
    # x_ref:     (Cp, nhw)            activations, channels on sublanes, pixels on lanes
    # masks_ref: (9, 1, nhw)          per-tap border masks
    # w{i}_ref:  (9, Cout_p, Cin_p)   per-tap channel-mixing matrices
    # g/b:       (Cout_p, 1)          BN affine params
    # o_ref:     (1, nhw)

    def conv3x3(a, w_ref):
        cout = w_ref.shape[1]
        acc = jnp.zeros((cout, nhw), jnp.float32)
        for t, (oy, ox) in enumerate(_TAPS):
            s = oy * width + ox                      # source offset in flattened pixels
            if s == 0:
                sh = a
            else:
                # shifted[p] = a[p + s]  (wrap-around contributions are masked out)
                sh = pltpu.roll(a, shift=(-s) % nhw, axis=1)
            sh = sh * masks_ref[t]                   # zero "same" padding via mask
            acc = acc + jnp.dot(w_ref[t], sh, preferred_element_type=jnp.float32)
        return acc

    def bn_relu(y, g_ref, b_ref):
        inv_n = 1.0 / float(nhw)
        mean = jnp.sum(y, axis=1, keepdims=True) * inv_n           # per-channel (row) stats
        ex2 = jnp.sum(y * y, axis=1, keepdims=True) * inv_n
        var = ex2 - mean * mean                                    # biased variance
        scale = lax.rsqrt(var + _BN_EPS) * g_ref[...]
        return jnp.maximum((y - mean) * scale + b_ref[...], 0.0)

    a = x_ref[...]
    a = bn_relu(conv3x3(a, w1_ref), g1_ref, b1_ref)
    a = bn_relu(conv3x3(a, w2_ref), g2_ref, b2_ref)
    a = bn_relu(conv3x3(a, w3_ref), g3_ref, b3_ref)
    o_ref[...] = a[0:1, :]                                         # real output channel (Cout=1)


def _full_spec(arr):
    nd = arr.ndim
    return pl.BlockSpec(arr.shape, lambda nd=nd: (0,) * nd)


# ----------------------------------------------------------------------------
# Public forward: accepts NCHW (PyTorch convention) and PyTorch OIHW weights.
# ----------------------------------------------------------------------------
@jax.jit
def share_feature_forward(x_nchw, params):
    x = x_nchw.astype(jnp.float32)
    N, C0, H, W = x.shape
    NHW = N * H * W

    couts = (4, 8, 1)
    cins = (C0, 4, 8)

    # ---- layout prep (tiny; fused by XLA at the boundary) -------------------
    p_in0 = _round_up8(C0)
    x2 = jnp.transpose(x, (1, 0, 2, 3)).reshape(C0, NHW)
    x2 = jnp.zeros((p_in0, NHW), jnp.float32).at[:C0].set(x2)

    masks = _make_tap_masks(N, H, W)

    kernel_inputs = [x2, masks]
    for i, (ci, co) in enumerate(zip(cins, couts), start=1):
        w = params[f"w{i}"].astype(jnp.float32)                    # (co, ci, 3, 3) OIHW
        g = params[f"g{i}"].astype(jnp.float32)
        b = params[f"b{i}"].astype(jnp.float32)
        pi, po = _round_up8(ci), _round_up8(co)
        wt = jnp.transpose(w, (2, 3, 0, 1)).reshape(9, co, ci)     # (tap, co, ci)
        wp = jnp.zeros((9, po, pi), jnp.float32).at[:, :co, :ci].set(wt)
        gp = jnp.zeros((po, 1), jnp.float32).at[:co, 0].set(g)
        bp = jnp.zeros((po, 1), jnp.float32).at[:co, 0].set(b)
        kernel_inputs += [wp, gp, bp]

    out_flat = pl.pallas_call(
        functools.partial(_share_feature_kernel, width=W, nhw=NHW),
        out_shape=jax.ShapeDtypeStruct((1, NHW), jnp.float32),
        in_specs=[_full_spec(a) for a in kernel_inputs],
        out_specs=pl.BlockSpec((1, NHW), lambda: (0, 0)),
    )(*kernel_inputs)

    # (1, N*H*W) -> (N, 1, H, W)
    return out_flat.reshape(N, H, W)[:, None, :, :]


# ----------------------------------------------------------------------------
# Parameter init (deterministic stand-in for PyTorch kaiming-uniform) + reference
# ----------------------------------------------------------------------------
def init_share_feature_params(num_chs, key):
    ks = jax.random.split(key, 3)

    def conv_w(k, cout, cin):
        fan_in = cin * 9
        bound = 1.0 / jnp.sqrt(fan_in)
        return jax.random.uniform(k, (cout, cin, 3, 3), jnp.float32, -bound, bound)

    return {
        "w1": conv_w(ks[0], 4, num_chs), "g1": jnp.ones((4,), jnp.float32), "b1": jnp.zeros((4,), jnp.float32),
        "w2": conv_w(ks[1], 8, 4),       "g2": jnp.ones((8,), jnp.float32), "b2": jnp.zeros((8,), jnp.float32),
        "w3": conv_w(ks[2], 1, 8),       "g3": jnp.ones((1,), jnp.float32), "b3": jnp.zeros((1,), jnp.float32),
    }


def share_feature_reference(x_nchw, params):
    x = x_nchw.astype(jnp.float32)
    for i in (1, 2, 3):
        w = params[f"w{i}"]
        y = lax.conv_general_dilated(
            x, w, window_strides=(1, 1), padding="SAME",
            dimension_numbers=("NCHW", "OIHW", "NCHW"))
        mean = jnp.mean(y, axis=(0, 2, 3), keepdims=True)
        var = jnp.mean((y - mean) ** 2, axis=(0, 2, 3), keepdims=True)
        g = params[f"g{i}"].reshape(1, -1, 1, 1)
        b = params[f"b{i}"].reshape(1, -1, 1, 1)
        x = jnp.maximum((y - mean) * lax.rsqrt(var + _BN_EPS) * g + b, 0.0)
    return x


if __name__ == "__main__":
    key = jax.random.PRNGKey(0)
    k_x, k_p = jax.random.split(key)

    num_chs = 4
    x = jax.random.normal(k_x, (2, num_chs, 16, 16), jnp.float32)   # NCHW, like PyTorch
    params = init_share_feature_params(num_chs, k_p)

    out = jax.block_until_ready(share_feature_forward(x, params))
    ref = share_feature_reference(x, params)

    assert out.shape == (2, 1, 16, 16), out.shape
    max_err = float(jnp.max(jnp.abs(out - ref)))
    assert jnp.allclose(out, ref, rtol=2e-4, atol=2e-4), max_err

    print("KERNEL_OK")
</pallas_src>

<mosaic_0001>
module attributes {stable_mosaic.version = 11 : i64} {
  func.func @_share_feature_kernel(%arg0: memref<8x512xf32, #tpu.memory_space<vmem>>, %arg1: memref<9x1x512xf32, #tpu.memory_space<vmem>>, %arg2: memref<9x8x8xf32, #tpu.memory_space<vmem>>, %arg3: memref<8x1xf32, #tpu.memory_space<vmem>>, %arg4: memref<8x1xf32, #tpu.memory_space<vmem>>, %arg5: memref<9x8x8xf32, #tpu.memory_space<vmem>>, %arg6: memref<8x1xf32, #tpu.memory_space<vmem>>, %arg7: memref<8x1xf32, #tpu.memory_space<vmem>>, %arg8: memref<9x8x8xf32, #tpu.memory_space<vmem>>, %arg9: memref<8x1xf32, #tpu.memory_space<vmem>>, %arg10: memref<8x1xf32, #tpu.memory_space<vmem>>, %arg11: memref<1x512xf32, #tpu.memory_space<vmem>>) attributes {dimension_semantics = [], scalar_prefetch = 0 : i64, scratch_operands = 0 : i64, tpu.core_type = #tpu.core_type<tc>} {
    %c0 = arith.constant 0 : index
    %c0_0 = arith.constant 0 : index
    %0 = vector.load %arg0[%c0, %c0_0] : memref<8x512xf32, #tpu.memory_space<vmem>>, vector<8x512xf32>
    %cst = arith.constant 0.000000e+00 : f32
    %1 = vector.broadcast %cst : f32 to vector<8x512xf32>
    %c17_i32 = arith.constant 17 : i32
    %2 = tpu.dynamic_rotate %0 by %c17_i32 dim 1 : vector<8x512xf32>, i32 -> vector<8x512xf32>
    %c0_1 = arith.constant 0 : index
    %c0_2 = arith.constant 0 : index
    %c0_3 = arith.constant 0 : index
    %3 = vector.load %arg1[%c0_1, %c0_2, %c0_3] : memref<9x1x512xf32, #tpu.memory_space<vmem>>, vector<1x1x512xf32>
    %4 = vector.shape_cast %3 : vector<1x1x512xf32> to vector<1x512xf32>
    %5 = vector.broadcast %4 : vector<1x512xf32> to vector<8x512xf32>
    %6 = arith.mulf %2, %5 : vector<8x512xf32>
    %c0_4 = arith.constant 0 : index
    %c0_5 = arith.constant 0 : index
    %c0_6 = arith.constant 0 : index
    %7 = vector.load %arg2[%c0_4, %c0_5, %c0_6] : memref<9x8x8xf32, #tpu.memory_space<vmem>>, vector<1x8x8xf32>
    %8 = vector.shape_cast %7 : vector<1x8x8xf32> to vector<8x8xf32>
    %cst_7 = arith.constant dense<0.000000e+00> : vector<8x512xf32>
    %9 = tpu.matmul %8, %6, %cst_7 {dimension_numbers = #tpu.dot_dimension_numbers<[1], [0], [0], [1], [0, 0, 1, 1], [], []>} : vector<8x8xf32>, vector<8x512xf32>, vector<8x512xf32> -> vector<8x512xf32>
    %10 = arith.addf %1, %9 : vector<8x512xf32>
    %c16_i32 = arith.constant 16 : i32
    %11 = tpu.dynamic_rotate %0 by %c16_i32 dim 1 : vector<8x512xf32>, i32 -> vector<8x512xf32>
    %c1 = arith.constant 1 : index
    %c0_8 = arith.constant 0 : index
    %c0_9 = arith.constant 0 : index
    %12 = vector.load %arg1[%c1, %c0_8, %c0_9] : memref<9x1x512xf32, #tpu.memory_space<vmem>>, vector<1x1x512xf32>
    %13 = vector.shape_cast %12 : vector<1x1x512xf32> to vector<1x512xf32>
    %14 = vector.broadcast %13 : vector<1x512xf32> to vector<8x512xf32>
    %15 = arith.mulf %11, %14 : vector<8x512xf32>
    %c1_10 = arith.constant 1 : index
    %c0_11 = arith.constant 0 : index
    %c0_12 = arith.constant 0 : index
    %16 = vector.load %arg2[%c1_10, %c0_11, %c0_12] : memref<9x8x8xf32, #tpu.memory_space<vmem>>, vector<1x8x8xf32>
    %17 = vector.shape_cast %16 : vector<1x8x8xf32> to vector<8x8xf32>
    %cst_13 = arith.constant dense<0.000000e+00> : vector<8x512xf32>
    %18 = tpu.matmul %17, %15, %cst_13 {dimension_numbers = #tpu.dot_dimension_numbers<[1], [0], [0], [1], [0, 0, 1, 1], [], []>} : vector<8x8xf32>, vector<8x512xf32>, vector<8x512xf32> -> vector<8x512xf32>
    %19 = arith.addf %10, %18 : vector<8x512xf32>
    %c15_i32 = arith.constant 15 : i32
    %20 = tpu.dynamic_rotate %0 by %c15_i32 dim 1 : vector<8x512xf32>, i32 -> vector<8x512xf32>
    %c2 = arith.constant 2 : index
    %c0_14 = arith.constant 0 : index
    %c0_15 = arith.constant 0 : index
    %21 = vector.load %arg1[%c2, %c0_14, %c0_15] : memref<9x1x512xf32, #tpu.memory_space<vmem>>, vector<1x1x512xf32>
    %22 = vector.shape_cast %21 : vector<1x1x512xf32> to vector<1x512xf32>
    %23 = vector.broadcast %22 : vector<1x512xf32> to vector<8x512xf32>
    %24 = arith.mulf %20, %23 : vector<8x512xf32>
    %c2_16 = arith.constant 2 : index
    %c0_17 = arith.constant 0 : index
    %c0_18 = arith.constant 0 : index
    %25 = vector.load %arg2[%c2_16, %c0_17, %c0_18] : memref<9x8x8xf32, #tpu.memory_space<vmem>>, vector<1x8x8xf32>
    %26 = vector.shape_cast %25 : vector<1x8x8xf32> to vector<8x8xf32>
    %cst_19 = arith.constant dense<0.000000e+00> : vector<8x512xf32>
    %27 = tpu.matmul %26, %24, %cst_19 {dimension_numbers = #tpu.dot_dimension_numbers<[1], [0], [0], [1], [0, 0, 1, 1], [], []>} : vector<8x8xf32>, vector<8x512xf32>, vector<8x512xf32> -> vector<8x512xf32>
    %28 = arith.addf %19, %27 : vector<8x512xf32>
    %c1_i32 = arith.constant 1 : i32
    %29 = tpu.dynamic_rotate %0 by %c1_i32 dim 1 : vector<8x512xf32>, i32 -> vector<8x512xf32>
    %c3 = arith.constant 3 : index
    %c0_20 = arith.constant 0 : index
    %c0_21 = arith.constant 0 : index
    %30 = vector.load %arg1[%c3, %c0_20, %c0_21] : memref<9x1x512xf32, #tpu.memory_space<vmem>>, vector<1x1x512xf32>
    %31 = vector.shape_cast %30 : vector<1x1x512xf32> to vector<1x512xf32>
    %32 = vector.broadcast %31 : vector<1x512xf32> to vector<8x512xf32>
    %33 = arith.mulf %29, %32 : vector<8x512xf32>
    %c3_22 = arith.constant 3 : index
    %c0_23 = arith.constant 0 : index
    %c0_24 = arith.constant 0 : index
    %34 = vector.load %arg2[%c3_22, %c0_23, %c0_24] : memref<9x8x8xf32, #tpu.memory_space<vmem>>, vector<1x8x8xf32>
    %35 = vector.shape_cast %34 : vector<1x8x8xf32> to vector<8x8xf32>
    %cst_25 = arith.constant dense<0.000000e+00> : vector<8x512xf32>
    %36 = tpu.matmul %35, %33, %cst_25 {dimension_numbers = #tpu.dot_dimension_numbers<[1], [0], [0], [1], [0, 0, 1, 1], [], []>} : vector<8x8xf32>, vector<8x512xf32>, vector<8x512xf32> -> vector<8x512xf32>
    %37 = arith.addf %28, %36 : vector<8x512xf32>
    %c4 = arith.constant 4 : index
    %c0_26 = arith.constant 0 : index
    %c0_27 = arith.constant 0 : index
    %38 = vector.load %arg1[%c4, %c0_26, %c0_27] : memref<9x1x512xf32, #tpu.memory_space<vmem>>, vector<1x1x512xf32>
    %39 = vector.shape_cast %38 : vector<1x1x512xf32> to vector<1x512xf32>
    %40 = vector.broadcast %39 : vector<1x512xf32> to vector<8x512xf32>
    %41 = arith.mulf %0, %40 : vector<8x512xf32>
    %c4_28 = arith.constant 4 : index
    %c0_29 = arith.constant 0 : index
    %c0_30 = arith.constant 0 : index
    %42 = vector.load %arg2[%c4_28, %c0_29, %c0_30] : memref<9x8x8xf32, #tpu.memory_space<vmem>>, vector<1x8x8xf32>
    %43 = vector.shape_cast %42 : vector<1x8x8xf32> to vector<8x8xf32>
    %cst_31 = arith.constant dense<0.000000e+00> : vector<8x512xf32>
    %44 = tpu.matmul %43, %41, %cst_31 {dimension_numbers = #tpu.dot_dimension_numbers<[1], [0], [0], [1], [0, 0, 1, 1], [], []>} : vector<8x8xf32>, vector<8x512xf32>, vector<8x512xf32> -> vector<8x512xf32>
    %45 = arith.addf %37, %44 : vector<8x512xf32>
    %c511_i32 = arith.constant 511 : i32
    %46 = tpu.dynamic_rotate %0 by %c511_i32 dim 1 : vector<8x512xf32>, i32 -> vector<8x512xf32>
    %c5 = arith.constant 5 : index
    %c0_32 = arith.constant 0 : index
    %c0_33 = arith.constant 0 : index
    %47 = vector.load %arg1[%c5, %c0_32, %c0_33] : memref<9x1x512xf32, #tpu.memory_space<vmem>>, vector<1x1x512xf32>
    %48 = vector.shape_cast %47 : vector<1x1x512xf32> to vector<1x512xf32>
    %49 = vector.broadcast %48 : vector<1x512xf32> to vector<8x512xf32>
    %50 = arith.mulf %46, %49 : vector<8x512xf32>
    %c5_34 = arith.constant 5 : index
    %c0_35 = arith.constant 0 : index
    %c0_36 = arith.constant 0 : index
    %51 = vector.load %arg2[%c5_34, %c0_35, %c0_36] : memref<9x8x8xf32, #tpu.memory_space<vmem>>, vector<1x8x8xf32>
    %52 = vector.shape_cast %51 : vector<1x8x8xf32> to vector<8x8xf32>
    %cst_37 = arith.constant dense<0.000000e+00> : vector<8x512xf32>
    %53 = tpu.matmul %52, %50, %cst_37 {dimension_numbers = #tpu.dot_dimension_numbers<[1], [0], [0], [1], [0, 0, 1, 1], [], []>} : vector<8x8xf32>, vector<8x512xf32>, vector<8x512xf32> -> vector<8x512xf32>
    %54 = arith.addf %45, %53 : vector<8x512xf32>
    %c497_i32 = arith.constant 497 : i32
    %55 = tpu.dynamic_rotate %0 by %c497_i32 dim 1 : vector<8x512xf32>, i32 -> vector<8x512xf32>
    %c6 = arith.constant 6 : index
    %c0_38 = arith.constant 0 : index
    %c0_39 = arith.constant 0 : index
    %56 = vector.load %arg1[%c6, %c0_38, %c0_39] : memref<9x1x512xf32, #tpu.memory_space<vmem>>, vector<1x1x512xf32>
    %57 = vector.shape_cast %56 : vector<1x1x512xf32> to vector<1x512xf32>
    %58 = vector.broadcast %57 : vector<1x512xf32> to vector<8x512xf32>
    %59 = arith.mulf %55, %58 : vector<8x512xf32>
    %c6_40 = arith.constant 6 : index
    %c0_41 = arith.constant 0 : index
    %c0_42 = arith.constant 0 : index
    %60 = vector.load %arg2[%c6_40, %c0_41, %c0_42] : memref<9x8x8xf32, #tpu.memory_space<vmem>>, vector<1x8x8xf32>
    %61 = vector.shape_cast %60 : vector<1x8x8xf32> to vector<8x8xf32>
    %cst_43 = arith.constant dense<0.000000e+00> : vector<8x512xf32>
    %62 = tpu.matmul %61, %59, %cst_43 {dimension_numbers = #tpu.dot_dimension_numbers<[1], [0], [0], [1], [0, 0, 1, 1], [], []>} : vector<8x8xf32>, vector<8x512xf32>, vector<8x512xf32> -> vector<8x512xf32>
    %63 = arith.addf %54, %62 : vector<8x512xf32>
    %c496_i32 = arith.constant 496 : i32
    %64 = tpu.dynamic_rotate %0 by %c496_i32 dim 1 : vector<8x512xf32>, i32 -> vector<8x512xf32>
    %c7 = arith.constant 7 : index
    %c0_44 = arith.constant 0 : index
    %c0_45 = arith.constant 0 : index
    %65 = vector.load %arg1[%c7, %c0_44, %c0_45] : memref<9x1x512xf32, #tpu.memory_space<vmem>>, vector<1x1x512xf32>
    %66 = vector.shape_cast %65 : vector<1x1x512xf32> to vector<1x512xf32>
    %67 = vector.broadcast %66 : vector<1x512xf32> to vector<8x512xf32>
    %68 = arith.mulf %64, %67 : vector<8x512xf32>
    %c7_46 = arith.constant 7 : index
    %c0_47 = arith.constant 0 : index
    %c0_48 = arith.constant 0 : index
    %69 = vector.load %arg2[%c7_46, %c0_47, %c0_48] : memref<9x8x8xf32, #tpu.memory_space<vmem>>, vector<1x8x8xf32>
    %70 = vector.shape_cast %69 : vector<1x8x8xf32> to vector<8x8xf32>
    %cst_49 = arith.constant dense<0.000000e+00> : vector<8x512xf32>
    %71 = tpu.matmul %70, %68, %cst_49 {dimension_numbers = #tpu.dot_dimension_numbers<[1], [0], [0], [1], [0, 0, 1, 1], [], []>} : vector<8x8xf32>, vector<8x512xf32>, vector<8x512xf32> -> vector<8x512xf32>
    %72 = arith.addf %63, %71 : vector<8x512xf32>
    %c495_i32 = arith.constant 495 : i32
    %73 = tpu.dynamic_rotate %0 by %c495_i32 dim 1 : vector<8x512xf32>, i32 -> vector<8x512xf32>
    %c8 = arith.constant 8 : index
    %c0_50 = arith.constant 0 : index
    %c0_51 = arith.constant 0 : index
    %74 = vector.load %arg1[%c8, %c0_50, %c0_51] : memref<9x1x512xf32, #tpu.memory_space<vmem>>, vector<1x1x512xf32>
    %75 = vector.shape_cast %74 : vector<1x1x512xf32> to vector<1x512xf32>
    %76 = vector.broadcast %75 : vector<1x512xf32> to vector<8x512xf32>
    %77 = arith.mulf %73, %76 : vector<8x512xf32>
    %c8_52 = arith.constant 8 : index
    %c0_53 = arith.constant 0 : index
    %c0_54 = arith.constant 0 : index
    %78 = vector.load %arg2[%c8_52, %c0_53, %c0_54] : memref<9x8x8xf32, #tpu.memory_space<vmem>>, vector<1x8x8xf32>
    %79 = vector.shape_cast %78 : vector<1x8x8xf32> to vector<8x8xf32>
    %cst_55 = arith.constant dense<0.000000e+00> : vector<8x512xf32>
    %80 = tpu.matmul %79, %77, %cst_55 {dimension_numbers = #tpu.dot_dimension_numbers<[1], [0], [0], [1], [0, 0, 1, 1], [], []>} : vector<8x8xf32>, vector<8x512xf32>, vector<8x512xf32> -> vector<8x512xf32>
    %81 = arith.addf %72, %80 : vector<8x512xf32>
    %cst_56 = arith.constant dense<0.000000e+00> : vector<8xf32>
    %82 = vector.multi_reduction <add>, %81, %cst_56 [1] : vector<8x512xf32> to vector<8xf32>
    %83 = vector.shape_cast %82 : vector<8xf32> to vector<8x1xf32>
    %cst_57 = arith.constant 0.001953125 : f32
    %84 = vector.broadcast %cst_57 : f32 to vector<8x1xf32>
    %85 = arith.mulf %83, %84 : vector<8x1xf32>
    %86 = arith.mulf %81, %81 : vector<8x512xf32>
    %cst_58 = arith.constant dense<0.000000e+00> : vector<8xf32>
    %87 = vector.multi_reduction <add>, %86, %cst_58 [1] : vector<8x512xf32> to vector<8xf32>
    %88 = vector.shape_cast %87 : vector<8xf32> to vector<8x1xf32>
    %cst_59 = arith.constant 0.001953125 : f32
    %89 = vector.broadcast %cst_59 : f32 to vector<8x1xf32>
    %90 = arith.mulf %88, %89 : vector<8x1xf32>
    %91 = arith.mulf %85, %85 : vector<8x1xf32>
    %92 = arith.subf %90, %91 : vector<8x1xf32>
    %cst_60 = arith.constant 9.99999974E-6 : f32
    %93 = vector.broadcast %cst_60 : f32 to vector<8x1xf32>
    %94 = arith.addf %92, %93 : vector<8x1xf32>
    %95 = math.rsqrt %94 : vector<8x1xf32>
    %c0_61 = arith.constant 0 : index
    %c0_62 = arith.constant 0 : index
    %96 = vector.load %arg3[%c0_61, %c0_62] : memref<8x1xf32, #tpu.memory_space<vmem>>, vector<8x1xf32>
    %97 = arith.mulf %95, %96 : vector<8x1xf32>
    %98 = vector.broadcast %85 : vector<8x1xf32> to vector<8x512xf32>
    %99 = arith.subf %81, %98 : vector<8x512xf32>
    %100 = vector.broadcast %97 : vector<8x1xf32> to vector<8x512xf32>
    %101 = arith.mulf %99, %100 : vector<8x512xf32>
    %c0_63 = arith.constant 0 : index
    %c0_64 = arith.constant 0 : index
    %102 = vector.load %arg4[%c0_63, %c0_64] : memref<8x1xf32, #tpu.memory_space<vmem>>, vector<8x1xf32>
    %103 = vector.broadcast %102 : vector<8x1xf32> to vector<8x512xf32>
    %104 = arith.addf %101, %103 : vector<8x512xf32>
    %cst_65 = arith.constant 0.000000e+00 : f32
    %105 = vector.broadcast %cst_65 : f32 to vector<8x512xf32>
    %106 = arith.maximumf %104, %105 : vector<8x512xf32>
    %cst_66 = arith.constant 0.000000e+00 : f32
    %107 = vector.broadcast %cst_66 : f32 to vector<8x512xf32>
    %c17_i32_67 = arith.constant 17 : i32
    %108 = tpu.dynamic_rotate %106 by %c17_i32_67 dim 1 : vector<8x512xf32>, i32 -> vector<8x512xf32>
    %c0_68 = arith.constant 0 : index
    %c0_69 = arith.constant 0 : index
    %c0_70 = arith.constant 0 : index
    %109 = vector.load %arg1[%c0_68, %c0_69, %c0_70] : memref<9x1x512xf32, #tpu.memory_space<vmem>>, vector<1x1x512xf32>
    %110 = vector.shape_cast %109 : vector<1x1x512xf32> to vector<1x512xf32>
    %111 = vector.broadcast %110 : vector<1x512xf32> to vector<8x512xf32>
    %112 = arith.mulf %108, %111 : vector<8x512xf32>
    %c0_71 = arith.constant 0 : index
    %c0_72 = arith.constant 0 : index
    %c0_73 = arith.constant 0 : index
    %113 = vector.load %arg5[%c0_71, %c0_72, %c0_73] : memref<9x8x8xf32, #tpu.memory_space<vmem>>, vector<1x8x8xf32>
    %114 = vector.shape_cast %113 : vector<1x8x8xf32> to vector<8x8xf32>
    %cst_74 = arith.constant dense<0.000000e+00> : vector<8x512xf32>
    %115 = tpu.matmul %114, %112, %cst_74 {dimension_numbers = #tpu.dot_dimension_numbers<[1], [0], [0], [1], [0, 0, 1, 1], [], []>} : vector<8x8xf32>, vector<8x512xf32>, vector<8x512xf32> -> vector<8x512xf32>
    %116 = arith.addf %107, %115 : vector<8x512xf32>
    %c16_i32_75 = arith.constant 16 : i32
    %117 = tpu.dynamic_rotate %106 by %c16_i32_75 dim 1 : vector<8x512xf32>, i32 -> vector<8x512xf32>
    %c1_76 = arith.constant 1 : index
    %c0_77 = arith.constant 0 : index
    %c0_78 = arith.constant 0 : index
    %118 = vector.load %arg1[%c1_76, %c0_77, %c0_78] : memref<9x1x512xf32, #tpu.memory_space<vmem>>, vector<1x1x512xf32>
    %119 = vector.shape_cast %118 : vector<1x1x512xf32> to vector<1x512xf32>
    %120 = vector.broadcast %119 : vector<1x512xf32> to vector<8x512xf32>
    %121 = arith.mulf %117, %120 : vector<8x512xf32>
    %c1_79 = arith.constant 1 : index
    %c0_80 = arith.constant 0 : index
    %c0_81 = arith.constant 0 : index
    %122 = vector.load %arg5[%c1_79, %c0_80, %c0_81] : memref<9x8x8xf32, #tpu.memory_space<vmem>>, vector<1x8x8xf32>
    %123 = vector.shape_cast %122 : vector<1x8x8xf32> to vector<8x8xf32>
    %cst_82 = arith.constant dense<0.000000e+00> : vector<8x512xf32>
    %124 = tpu.matmul %123, %121, %cst_82 {dimension_numbers = #tpu.dot_dimension_numbers<[1], [0], [0], [1], [0, 0, 1, 1], [], []>} : vector<8x8xf32>, vector<8x512xf32>, vector<8x512xf32> -> vector<8x512xf32>
    %125 = arith.addf %116, %124 : vector<8x512xf32>
    %c15_i32_83 = arith.constant 15 : i32
    %126 = tpu.dynamic_rotate %106 by %c15_i32_83 dim 1 : vector<8x512xf32>, i32 -> vector<8x512xf32>
    %c2_84 = arith.constant 2 : index
    %c0_85 = arith.constant 0 : index
    %c0_86 = arith.constant 0 : index
    %127 = vector.load %arg1[%c2_84, %c0_85, %c0_86] : memref<9x1x512xf32, #tpu.memory_space<vmem>>, vector<1x1x512xf32>
    %128 = vector.shape_cast %127 : vector<1x1x512xf32> to vector<1x512xf32>
    %129 = vector.broadcast %128 : vector<1x512xf32> to vector<8x512xf32>
    %130 = arith.mulf %126, %129 : vector<8x512xf32>
    %c2_87 = arith.constant 2 : index
    %c0_88 = arith.constant 0 : index
    %c0_89 = arith.constant 0 : index
    %131 = vector.load %arg5[%c2_87, %c0_88, %c0_89] : memref<9x8x8xf32, #tpu.memory_space<vmem>>, vector<1x8x8xf32>
    %132 = vector.shape_cast %131 : vector<1x8x8xf32> to vector<8x8xf32>
    %cst_90 = arith.constant dense<0.000000e+00> : vector<8x512xf32>
    %133 = tpu.matmul %132, %130, %cst_90 {dimension_numbers = #tpu.dot_dimension_numbers<[1], [0], [0], [1], [0, 0, 1, 1], [], []>} : vector<8x8xf32>, vector<8x512xf32>, vector<8x512xf32> -> vector<8x512xf32>
    %134 = arith.addf %125, %133 : vector<8x512xf32>
    %c1_i32_91 = arith.constant 1 : i32
    %135 = tpu.dynamic_rotate %106 by %c1_i32_91 dim 1 : vector<8x512xf32>, i32 -> vector<8x512xf32>
    %c3_92 = arith.constant 3 : index
    %c0_93 = arith.constant 0 : index
    %c0_94 = arith.constant 0 : index
    %136 = vector.load %arg1[%c3_92, %c0_93, %c0_94] : memref<9x1x512xf32, #tpu.memory_space<vmem>>, vector<1x1x512xf32>
    %137 = vector.shape_cast %136 : vector<1x1x512xf32> to vector<1x512xf32>
    %138 = vector.broadcast %137 : vector<1x512xf32> to vector<8x512xf32>
    %139 = arith.mulf %135, %138 : vector<8x512xf32>
    %c3_95 = arith.constant 3 : index
    %c0_96 = arith.constant 0 : index
    %c0_97 = arith.constant 0 : index
    %140 = vector.load %arg5[%c3_95, %c0_96, %c0_97] : memref<9x8x8xf32, #tpu.memory_space<vmem>>, vector<1x8x8xf32>
    %141 = vector.shape_cast %140 : vector<1x8x8xf32> to vector<8x8xf32>
    %cst_98 = arith.constant dense<0.000000e+00> : vector<8x512xf32>
    %142 = tpu.matmul %141, %139, %cst_98 {dimension_numbers = #tpu.dot_dimension_numbers<[1], [0], [0], [1], [0, 0, 1, 1], [], []>} : vector<8x8xf32>, vector<8x512xf32>, vector<8x512xf32> -> vector<8x512xf32>
    %143 = arith.addf %134, %142 : vector<8x512xf32>
    %c4_99 = arith.constant 4 : index
    %c0_100 = arith.constant 0 : index
    %c0_101 = arith.constant 0 : index
    %144 = vector.load %arg1[%c4_99, %c0_100, %c0_101] : memref<9x1x512xf32, #tpu.memory_space<vmem>>, vector<1x1x512xf32>
    %145 = vector.shape_cast %144 : vector<1x1x512xf32> to vector<1x512xf32>
    %146 = vector.broadcast %145 : vector<1x512xf32> to vector<8x512xf32>
    %147 = arith.mulf %106, %146 : vector<8x512xf32>
    %c4_102 = arith.constant 4 : index
    %c0_103 = arith.constant 0 : index
    %c0_104 = arith.constant 0 : index
    %148 = vector.load %arg5[%c4_102, %c0_103, %c0_104] : memref<9x8x8xf32, #tpu.memory_space<vmem>>, vector<1x8x8xf32>
    %149 = vector.shape_cast %148 : vector<1x8x8xf32> to vector<8x8xf32>
    %cst_105 = arith.constant dense<0.000000e+00> : vector<8x512xf32>
    %150 = tpu.matmul %149, %147, %cst_105 {dimension_numbers = #tpu.dot_dimension_numbers<[1], [0], [0], [1], [0, 0, 1, 1], [], []>} : vector<8x8xf32>, vector<8x512xf32>, vector<8x512xf32> -> vector<8x512xf32>
    %151 = arith.addf %143, %150 : vector<8x512xf32>
    %c511_i32_106 = arith.constant 511 : i32
    %152 = tpu.dynamic_rotate %106 by %c511_i32_106 dim 1 : vector<8x512xf32>, i32 -> vector<8x512xf32>
    %c5_107 = arith.constant 5 : index
    %c0_108 = arith.constant 0 : index
    %c0_109 = arith.constant 0 : index
    %153 = vector.load %arg1[%c5_107, %c0_108, %c0_109] : memref<9x1x512xf32, #tpu.memory_space<vmem>>, vector<1x1x512xf32>
    %154 = vector.shape_cast %153 : vector<1x1x512xf32> to vector<1x512xf32>
    %155 = vector.broadcast %154 : vector<1x512xf32> to vector<8x512xf32>
    %156 = arith.mulf %152, %155 : vector<8x512xf32>
    %c5_110 = arith.constant 5 : index
    %c0_111 = arith.constant 0 : index
    %c0_112 = arith.constant 0 : index
    %157 = vector.load %arg5[%c5_110, %c0_111, %c0_112] : memref<9x8x8xf32, #tpu.memory_space<vmem>>, vector<1x8x8xf32>
    %158 = vector.shape_cast %157 : vector<1x8x8xf32> to vector<8x8xf32>
    %cst_113 = arith.constant dense<0.000000e+00> : vector<8x512xf32>
    %159 = tpu.matmul %158, %156, %cst_113 {dimension_numbers = #tpu.dot_dimension_numbers<[1], [0], [0], [1], [0, 0, 1, 1], [], []>} : vector<8x8xf32>, vector<8x512xf32>, vector<8x512xf32> -> vector<8x512xf32>
    %160 = arith.addf %151, %159 : vector<8x512xf32>
    %c497_i32_114 = arith.constant 497 : i32
    %161 = tpu.dynamic_rotate %106 by %c497_i32_114 dim 1 : vector<8x512xf32>, i32 -> vector<8x512xf32>
    %c6_115 = arith.constant 6 : index
    %c0_116 = arith.constant 0 : index
    %c0_117 = arith.constant 0 : index
    %162 = vector.load %arg1[%c6_115, %c0_116, %c0_117] : memref<9x1x512xf32, #tpu.memory_space<vmem>>, vector<1x1x512xf32>
    %163 = vector.shape_cast %162 : vector<1x1x512xf32> to vector<1x512xf32>
    %164 = vector.broadcast %163 : vector<1x512xf32> to vector<8x512xf32>
    %165 = arith.mulf %161, %164 : vector<8x512xf32>
    %c6_118 = arith.constant 6 : index
    %c0_119 = arith.constant 0 : index
    %c0_120 = arith.constant 0 : index
    %166 = vector.load %arg5[%c6_118, %c0_119, %c0_120] : memref<9x8x8xf32, #tpu.memory_space<vmem>>, vector<1x8x8xf32>
    %167 = vector.shape_cast %166 : vector<1x8x8xf32> to vector<8x8xf32>
    %cst_121 = arith.constant dense<0.000000e+00> : vector<8x512xf32>
    %168 = tpu.matmul %167, %165, %cst_121 {dimension_numbers = #tpu.dot_dimension_numbers<[1], [0], [0], [1], [0, 0, 1, 1], [], []>} : vector<8x8xf32>, vector<8x512xf32>, vector<8x512xf32> -> vector<8x512xf32>
    %169 = arith.addf %160, %168 : vector<8x512xf32>
    %c496_i32_122 = arith.constant 496 : i32
    %170 = tpu.dynamic_rotate %106 by %c496_i32_122 dim 1 : vector<8x512xf32>, i32 -> vector<8x512xf32>
    %c7_123 = arith.constant 7 : index
    %c0_124 = arith.constant 0 : index
    %c0_125 = arith.constant 0 : index
    %171 = vector.load %arg1[%c7_123, %c0_124, %c0_125] : memref<9x1x512xf32, #tpu.memory_space<vmem>>, vector<1x1x512xf32>
    %172 = vector.shape_cast %171 : vector<1x1x512xf32> to vector<1x512xf32>
    %173 = vector.broadcast %172 : vector<1x512xf32> to vector<8x512xf32>
    %174 = arith.mulf %170, %173 : vector<8x512xf32>
    %c7_126 = arith.constant 7 : index
    %c0_127 = arith.constant 0 : index
    %c0_128 = arith.constant 0 : index
    %175 = vector.load %arg5[%c7_126, %c0_127, %c0_128] : memref<9x8x8xf32, #tpu.memory_space<vmem>>, vector<1x8x8xf32>
    %176 = vector.shape_cast %175 : vector<1x8x8xf32> to vector<8x8xf32>
    %cst_129 = arith.constant dense<0.000000e+00> : vector<8x512xf32>
    %177 = tpu.matmul %176, %174, %cst_129 {dimension_numbers = #tpu.dot_dimension_numbers<[1], [0], [0], [1], [0, 0, 1, 1], [], []>} : vector<8x8xf32>, vector<8x512xf32>, vector<8x512xf32> -> vector<8x512xf32>
    %178 = arith.addf %169, %177 : vector<8x512xf32>
    %c495_i32_130 = arith.constant 495 : i32
    %179 = tpu.dynamic_rotate %106 by %c495_i32_130 dim 1 : vector<8x512xf32>, i32 -> vector<8x512xf32>
    %c8_131 = arith.constant 8 : index
    %c0_132 = arith.constant 0 : index
    %c0_133 = arith.constant 0 : index
    %180 = vector.load %arg1[%c8_131, %c0_132, %c0_133] : memref<9x1x512xf32, #tpu.memory_space<vmem>>, vector<1x1x512xf32>
    %181 = vector.shape_cast %180 : vector<1x1x512xf32> to vector<1x512xf32>
    %182 = vector.broadcast %181 : vector<1x512xf32> to vector<8x512xf32>
    %183 = arith.mulf %179, %182 : vector<8x512xf32>
    %c8_134 = arith.constant 8 : index
    %c0_135 = arith.constant 0 : index
    %c0_136 = arith.constant 0 : index
    %184 = vector.load %arg5[%c8_134, %c0_135, %c0_136] : memref<9x8x8xf32, #tpu.memory_space<vmem>>, vector<1x8x8xf32>
    %185 = vector.shape_cast %184 : vector<1x8x8xf32> to vector<8x8xf32>
    %cst_137 = arith.constant dense<0.000000e+00> : vector<8x512xf32>
    %186 = tpu.matmul %185, %183, %cst_137 {dimension_numbers = #tpu.dot_dimension_numbers<[1], [0], [0], [1], [0, 0, 1, 1], [], []>} : vector<8x8xf32>, vector<8x512xf32>, vector<8x512xf32> -> vector<8x512xf32>
    %187 = arith.addf %178, %186 : vector<8x512xf32>
    %cst_138 = arith.constant dense<0.000000e+00> : vector<8xf32>
    %188 = vector.multi_reduction <add>, %187, %cst_138 [1] : vector<8x512xf32> to vector<8xf32>
    %189 = vector.shape_cast %188 : vector<8xf32> to vector<8x1xf32>
    %cst_139 = arith.constant 0.001953125 : f32
    %190 = vector.broadcast %cst_139 : f32 to vector<8x1xf32>
    %191 = arith.mulf %189, %190 : vector<8x1xf32>
    %192 = arith.mulf %187, %187 : vector<8x512xf32>
    %cst_140 = arith.constant dense<0.000000e+00> : vector<8xf32>
    %193 = vector.multi_reduction <add>, %192, %cst_140 [1] : vector<8x512xf32> to vector<8xf32>
    %194 = vector.shape_cast %193 : vector<8xf32> to vector<8x1xf32>
    %cst_141 = arith.constant 0.001953125 : f32
    %195 = vector.broadcast %cst_141 : f32 to vector<8x1xf32>
    %196 = arith.mulf %194, %195 : vector<8x1xf32>
    %197 = arith.mulf %191, %191 : vector<8x1xf32>
    %198 = arith.subf %196, %197 : vector<8x1xf32>
    %cst_142 = arith.constant 9.99999974E-6 : f32
    %199 = vector.broadcast %cst_142 : f32 to vector<8x1xf32>
    %200 = arith.addf %198, %199 : vector<8x1xf32>
    %201 = math.rsqrt %200 : vector<8x1xf32>
    %c0_143 = arith.constant 0 : index
    %c0_144 = arith.constant 0 : index
    %202 = vector.load %arg6[%c0_143, %c0_144] : memref<8x1xf32, #tpu.memory_space<vmem>>, vector<8x1xf32>
    %203 = arith.mulf %201, %202 : vector<8x1xf32>
    %204 = vector.broadcast %191 : vector<8x1xf32> to vector<8x512xf32>
    %205 = arith.subf %187, %204 : vector<8x512xf32>
    %206 = vector.broadcast %203 : vector<8x1xf32> to vector<8x512xf32>
    %207 = arith.mulf %205, %206 : vector<8x512xf32>
    %c0_145 = arith.constant 0 : index
    %c0_146 = arith.constant 0 : index
    %208 = vector.load %arg7[%c0_145, %c0_146] : memref<8x1xf32, #tpu.memory_space<vmem>>, vector<8x1xf32>
    %209 = vector.broadcast %208 : vector<8x1xf32> to vector<8x512xf32>
    %210 = arith.addf %207, %209 : vector<8x512xf32>
    %cst_147 = arith.constant 0.000000e+00 : f32
    %211 = vector.broadcast %cst_147 : f32 to vector<8x512xf32>
    %212 = arith.maximumf %210, %211 : vector<8x512xf32>
    %cst_148 = arith.constant 0.000000e+00 : f32
    %213 = vector.broadcast %cst_148 : f32 to vector<8x512xf32>
    %c17_i32_149 = arith.constant 17 : i32
    %214 = tpu.dynamic_rotate %212 by %c17_i32_149 dim 1 : vector<8x512xf32>, i32 -> vector<8x512xf32>
    %c0_150 = arith.constant 0 : index
    %c0_151 = arith.constant 0 : index
    %c0_152 = arith.constant 0 : index
    %215 = vector.load %arg1[%c0_150, %c0_151, %c0_152] : memref<9x1x512xf32, #tpu.memory_space<vmem>>, vector<1x1x512xf32>
    %216 = vector.shape_cast %215 : vector<1x1x512xf32> to vector<1x512xf32>
    %217 = vector.broadcast %216 : vector<1x512xf32> to vector<8x512xf32>
    %218 = arith.mulf %214, %217 : vector<8x512xf32>
    %c0_153 = arith.constant 0 : index
    %c0_154 = arith.constant 0 : index
    %c0_155 = arith.constant 0 : index
    %219 = vector.load %arg8[%c0_153, %c0_154, %c0_155] : memref<9x8x8xf32, #tpu.memory_space<vmem>>, vector<1x8x8xf32>
    %220 = vector.shape_cast %219 : vector<1x8x8xf32> to vector<8x8xf32>
    %cst_156 = arith.constant dense<0.000000e+00> : vector<8x512xf32>
    %221 = tpu.matmul %220, %218, %cst_156 {dimension_numbers = #tpu.dot_dimension_numbers<[1], [0], [0], [1], [0, 0, 1, 1], [], []>} : vector<8x8xf32>, vector<8x512xf32>, vector<8x512xf32> -> vector<8x512xf32>
    %222 = arith.addf %213, %221 : vector<8x512xf32>
    %c16_i32_157 = arith.constant 16 : i32
    %223 = tpu.dynamic_rotate %212 by %c16_i32_157 dim 1 : vector<8x512xf32>, i32 -> vector<8x512xf32>
    %c1_158 = arith.constant 1 : index
    %c0_159 = arith.constant 0 : index
    %c0_160 = arith.constant 0 : index
    %224 = vector.load %arg1[%c1_158, %c0_159, %c0_160] : memref<9x1x512xf32, #tpu.memory_space<vmem>>, vector<1x1x512xf32>
    %225 = vector.shape_cast %224 : vector<1x1x512xf32> to vector<1x512xf32>
    %226 = vector.broadcast %225 : vector<1x512xf32> to vector<8x512xf32>
    %227 = arith.mulf %223, %226 : vector<8x512xf32>
    %c1_161 = arith.constant 1 : index
    %c0_162 = arith.constant 0 : index
    %c0_163 = arith.constant 0 : index
    %228 = vector.load %arg8[%c1_161, %c0_162, %c0_163] : memref<9x8x8xf32, #tpu.memory_space<vmem>>, vector<1x8x8xf32>
    %229 = vector.shape_cast %228 : vector<1x8x8xf32> to vector<8x8xf32>
    %cst_164 = arith.constant dense<0.000000e+00> : vector<8x512xf32>
    %230 = tpu.matmul %229, %227, %cst_164 {dimension_numbers = #tpu.dot_dimension_numbers<[1], [0], [0], [1], [0, 0, 1, 1], [], []>} : vector<8x8xf32>, vector<8x512xf32>, vector<8x512xf32> -> vector<8x512xf32>
    %231 = arith.addf %222, %230 : vector<8x512xf32>
    %c15_i32_165 = arith.constant 15 : i32
    %232 = tpu.dynamic_rotate %212 by %c15_i32_165 dim 1 : vector<8x512xf32>, i32 -> vector<8x512xf32>
    %c2_166 = arith.constant 2 : index
    %c0_167 = arith.constant 0 : index
    %c0_168 = arith.constant 0 : index
    %233 = vector.load %arg1[%c2_166, %c0_167, %c0_168] : memref<9x1x512xf32, #tpu.memory_space<vmem>>, vector<1x1x512xf32>
    %234 = vector.shape_cast %233 : vector<1x1x512xf32> to vector<1x512xf32>
    %235 = vector.broadcast %234 : vector<1x512xf32> to vector<8x512xf32>
    %236 = arith.mulf %232, %235 : vector<8x512xf32>
    %c2_169 = arith.constant 2 : index
    %c0_170 = arith.constant 0 : index
    %c0_171 = arith.constant 0 : index
    %237 = vector.load %arg8[%c2_169, %c0_170, %c0_171] : memref<9x8x8xf32, #tpu.memory_space<vmem>>, vector<1x8x8xf32>
    %238 = vector.shape_cast %237 : vector<1x8x8xf32> to vector<8x8xf32>
    %cst_172 = arith.constant dense<0.000000e+00> : vector<8x512xf32>
    %239 = tpu.matmul %238, %236, %cst_172 {dimension_numbers = #tpu.dot_dimension_numbers<[1], [0], [0], [1], [0, 0, 1, 1], [], []>} : vector<8x8xf32>, vector<8x512xf32>, vector<8x512xf32> -> vector<8x512xf32>
    %240 = arith.addf %231, %239 : vector<8x512xf32>
    %c1_i32_173 = arith.constant 1 : i32
    %241 = tpu.dynamic_rotate %212 by %c1_i32_173 dim 1 : vector<8x512xf32>, i32 -> vector<8x512xf32>
    %c3_174 = arith.constant 3 : index
    %c0_175 = arith.constant 0 : index
    %c0_176 = arith.constant 0 : index
    %242 = vector.load %arg1[%c3_174, %c0_175, %c0_176] : memref<9x1x512xf32, #tpu.memory_space<vmem>>, vector<1x1x512xf32>
    %243 = vector.shape_cast %242 : vector<1x1x512xf32> to vector<1x512xf32>
    %244 = vector.broadcast %243 : vector<1x512xf32> to vector<8x512xf32>
    %245 = arith.mulf %241, %244 : vector<8x512xf32>
    %c3_177 = arith.constant 3 : index
    %c0_178 = arith.constant 0 : index
    %c0_179 = arith.constant 0 : index
    %246 = vector.load %arg8[%c3_177, %c0_178, %c0_179] : memref<9x8x8xf32, #tpu.memory_space<vmem>>, vector<1x8x8xf32>
    %247 = vector.shape_cast %246 : vector<1x8x8xf32> to vector<8x8xf32>
    %cst_180 = arith.constant dense<0.000000e+00> : vector<8x512xf32>
    %248 = tpu.matmul %247, %245, %cst_180 {dimension_numbers = #tpu.dot_dimension_numbers<[1], [0], [0], [1], [0, 0, 1, 1], [], []>} : vector<8x8xf32>, vector<8x512xf32>, vector<8x512xf32> -> vector<8x512xf32>
    %249 = arith.addf %240, %248 : vector<8x512xf32>
    %c4_181 = arith.constant 4 : index
    %c0_182 = arith.constant 0 : index
    %c0_183 = arith.constant 0 : index
    %250 = vector.load %arg1[%c4_181, %c0_182, %c0_183] : memref<9x1x512xf32, #tpu.memory_space<vmem>>, vector<1x1x512xf32>
    %251 = vector.shape_cast %250 : vector<1x1x512xf32> to vector<1x512xf32>
    %252 = vector.broadcast %251 : vector<1x512xf32> to vector<8x512xf32>
    %253 = arith.mulf %212, %252 : vector<8x512xf32>
    %c4_184 = arith.constant 4 : index
    %c0_185 = arith.constant 0 : index
    %c0_186 = arith.constant 0 : index
    %254 = vector.load %arg8[%c4_184, %c0_185, %c0_186] : memref<9x8x8xf32, #tpu.memory_space<vmem>>, vector<1x8x8xf32>
    %255 = vector.shape_cast %254 : vector<1x8x8xf32> to vector<8x8xf32>
    %cst_187 = arith.constant dense<0.000000e+00> : vector<8x512xf32>
    %256 = tpu.matmul %255, %253, %cst_187 {dimension_numbers = #tpu.dot_dimension_numbers<[1], [0], [0], [1], [0, 0, 1, 1], [], []>} : vector<8x8xf32>, vector<8x512xf32>, vector<8x512xf32> -> vector<8x512xf32>
    %257 = arith.addf %249, %256 : vector<8x512xf32>
    %c511_i32_188 = arith.constant 511 : i32
    %258 = tpu.dynamic_rotate %212 by %c511_i32_188 dim 1 : vector<8x512xf32>, i32 -> vector<8x512xf32>
    %c5_189 = arith.constant 5 : index
    %c0_190 = arith.constant 0 : index
    %c0_191 = arith.constant 0 : index
    %259 = vector.load %arg1[%c5_189, %c0_190, %c0_191] : memref<9x1x512xf32, #tpu.memory_space<vmem>>, vector<1x1x512xf32>
    %260 = vector.shape_cast %259 : vector<1x1x512xf32> to vector<1x512xf32>
    %261 = vector.broadcast %260 : vector<1x512xf32> to vector<8x512xf32>
    %262 = arith.mulf %258, %261 : vector<8x512xf32>
    %c5_192 = arith.constant 5 : index
    %c0_193 = arith.constant 0 : index
    %c0_194 = arith.constant 0 : index
    %263 = vector.load %arg8[%c5_192, %c0_193, %c0_194] : memref<9x8x8xf32, #tpu.memory_space<vmem>>, vector<1x8x8xf32>
    %264 = vector.shape_cast %263 : vector<1x8x8xf32> to vector<8x8xf32>
    %cst_195 = arith.constant dense<0.000000e+00> : vector<8x512xf32>
    %265 = tpu.matmul %264, %262, %cst_195 {dimension_numbers = #tpu.dot_dimension_numbers<[1], [0], [0], [1], [0, 0, 1, 1], [], []>} : vector<8x8xf32>, vector<8x512xf32>, vector<8x512xf32> -> vector<8x512xf32>
    %266 = arith.addf %257, %265 : vector<8x512xf32>
    %c497_i32_196 = arith.constant 497 : i32
    %267 = tpu.dynamic_rotate %212 by %c497_i32_196 dim 1 : vector<8x512xf32>, i32 -> vector<8x512xf32>
    %c6_197 = arith.constant 6 : index
    %c0_198 = arith.constant 0 : index
    %c0_199 = arith.constant 0 : index
    %268 = vector.load %arg1[%c6_197, %c0_198, %c0_199] : memref<9x1x512xf32, #tpu.memory_space<vmem>>, vector<1x1x512xf32>
    %269 = vector.shape_cast %268 : vector<1x1x512xf32> to vector<1x512xf32>
    %270 = vector.broadcast %269 : vector<1x512xf32> to vector<8x512xf32>
    %271 = arith.mulf %267, %270 : vector<8x512xf32>
    %c6_200 = arith.constant 6 : index
    %c0_201 = arith.constant 0 : index
    %c0_202 = arith.constant 0 : index
    %272 = vector.load %arg8[%c6_200, %c0_201, %c0_202] : memref<9x8x8xf32, #tpu.memory_space<vmem>>, vector<1x8x8xf32>
    %273 = vector.shape_cast %272 : vector<1x8x8xf32> to vector<8x8xf32>
    %cst_203 = arith.constant dense<0.000000e+00> : vector<8x512xf32>
    %274 = tpu.matmul %273, %271, %cst_203 {dimension_numbers = #tpu.dot_dimension_numbers<[1], [0], [0], [1], [0, 0, 1, 1], [], []>} : vector<8x8xf32>, vector<8x512xf32>, vector<8x512xf32> -> vector<8x512xf32>
    %275 = arith.addf %266, %274 : vector<8x512xf32>
    %c496_i32_204 = arith.constant 496 : i32
    %276 = tpu.dynamic_rotate %212 by %c496_i32_204 dim 1 : vector<8x512xf32>, i32 -> vector<8x512xf32>
    %c7_205 = arith.constant 7 : index
    %c0_206 = arith.constant 0 : index
    %c0_207 = arith.constant 0 : index
    %277 = vector.load %arg1[%c7_205, %c0_206, %c0_207] : memref<9x1x512xf32, #tpu.memory_space<vmem>>, vector<1x1x512xf32>
    %278 = vector.shape_cast %277 : vector<1x1x512xf32> to vector<1x512xf32>
    %279 = vector.broadcast %278 : vector<1x512xf32> to vector<8x512xf32>
    %280 = arith.mulf %276, %279 : vector<8x512xf32>
    %c7_208 = arith.constant 7 : index
    %c0_209 = arith.constant 0 : index
    %c0_210 = arith.constant 0 : index
    %281 = vector.load %arg8[%c7_208, %c0_209, %c0_210] : memref<9x8x8xf32, #tpu.memory_space<vmem>>, vector<1x8x8xf32>
    %282 = vector.shape_cast %281 : vector<1x8x8xf32> to vector<8x8xf32>
    %cst_211 = arith.constant dense<0.000000e+00> : vector<8x512xf32>
    %283 = tpu.matmul %282, %280, %cst_211 {dimension_numbers = #tpu.dot_dimension_numbers<[1], [0], [0], [1], [0, 0, 1, 1], [], []>} : vector<8x8xf32>, vector<8x512xf32>, vector<8x512xf32> -> vector<8x512xf32>
    %284 = arith.addf %275, %283 : vector<8x512xf32>
    %c495_i32_212 = arith.constant 495 : i32
    %285 = tpu.dynamic_rotate %212 by %c495_i32_212 dim 1 : vector<8x512xf32>, i32 -> vector<8x512xf32>
    %c8_213 = arith.constant 8 : index
    %c0_214 = arith.constant 0 : index
    %c0_215 = arith.constant 0 : index
    %286 = vector.load %arg1[%c8_213, %c0_214, %c0_215] : memref<9x1x512xf32, #tpu.memory_space<vmem>>, vector<1x1x512xf32>
    %287 = vector.shape_cast %286 : vector<1x1x512xf32> to vector<1x512xf32>
    %288 = vector.broadcast %287 : vector<1x512xf32> to vector<8x512xf32>
    %289 = arith.mulf %285, %288 : vector<8x512xf32>
    %c8_216 = arith.constant 8 : index
    %c0_217 = arith.constant 0 : index
    %c0_218 = arith.constant 0 : index
    %290 = vector.load %arg8[%c8_216, %c0_217, %c0_218] : memref<9x8x8xf32, #tpu.memory_space<vmem>>, vector<1x8x8xf32>
    %291 = vector.shape_cast %290 : vector<1x8x8xf32> to vector<8x8xf32>
    %cst_219 = arith.constant dense<0.000000e+00> : vector<8x512xf32>
    %292 = tpu.matmul %291, %289, %cst_219 {dimension_numbers = #tpu.dot_dimension_numbers<[1], [0], [0], [1], [0, 0, 1, 1], [], []>} : vector<8x8xf32>, vector<8x512xf32>, vector<8x512xf32> -> vector<8x512xf32>
    %293 = arith.addf %284, %292 : vector<8x512xf32>
    %cst_220 = arith.constant dense<0.000000e+00> : vector<8xf32>
    %294 = vector.multi_reduction <add>, %293, %cst_220 [1] : vector<8x512xf32> to vector<8xf32>
    %295 = vector.shape_cast %294 : vector<8xf32> to vector<8x1xf32>
    %cst_221 = arith.constant 0.001953125 : f32
    %296 = vector.broadcast %cst_221 : f32 to vector<8x1xf32>
    %297 = arith.mulf %295, %296 : vector<8x1xf32>
    %298 = arith.mulf %293, %293 : vector<8x512xf32>
    %cst_222 = arith.constant dense<0.000000e+00> : vector<8xf32>
    %299 = vector.multi_reduction <add>, %298, %cst_222 [1] : vector<8x512xf32> to vector<8xf32>
    %300 = vector.shape_cast %299 : vector<8xf32> to vector<8x1xf32>
    %cst_223 = arith.constant 0.001953125 : f32
    %301 = vector.broadcast %cst_223 : f32 to vector<8x1xf32>
    %302 = arith.mulf %300, %301 : vector<8x1xf32>
    %303 = arith.mulf %297, %297 : vector<8x1xf32>
    %304 = arith.subf %302, %303 : vector<8x1xf32>
    %cst_224 = arith.constant 9.99999974E-6 : f32
    %305 = vector.broadcast %cst_224 : f32 to vector<8x1xf32>
    %306 = arith.addf %304, %305 : vector<8x1xf32>
    %307 = math.rsqrt %306 : vector<8x1xf32>
    %c0_225 = arith.constant 0 : index
    %c0_226 = arith.constant 0 : index
    %308 = vector.load %arg9[%c0_225, %c0_226] : memref<8x1xf32, #tpu.memory_space<vmem>>, vector<8x1xf32>
    %309 = arith.mulf %307, %308 : vector<8x1xf32>
    %310 = vector.broadcast %297 : vector<8x1xf32> to vector<8x512xf32>
    %311 = arith.subf %293, %310 : vector<8x512xf32>
    %312 = vector.broadcast %309 : vector<8x1xf32> to vector<8x512xf32>
    %313 = arith.mulf %311, %312 : vector<8x512xf32>
    %c0_227 = arith.constant 0 : index
    %c0_228 = arith.constant 0 : index
    %314 = vector.load %arg10[%c0_227, %c0_228] : memref<8x1xf32, #tpu.memory_space<vmem>>, vector<8x1xf32>
    %315 = vector.broadcast %314 : vector<8x1xf32> to vector<8x512xf32>
    %316 = arith.addf %313, %315 : vector<8x512xf32>
    %cst_229 = arith.constant 0.000000e+00 : f32
    %317 = vector.broadcast %cst_229 : f32 to vector<8x512xf32>
    %318 = arith.maximumf %316, %317 : vector<8x512xf32>
    %319 = vector.extract_strided_slice %318 {offsets = [0, 0], sizes = [1, 512], strides = [1, 1]} : vector<8x512xf32> to vector<1x512xf32>
    %c0_230 = arith.constant 0 : index
    %c0_231 = arith.constant 0 : index
    %320 = vector.load %arg11[%c0_230, %c0_231] : memref<1x512xf32, #tpu.memory_space<vmem>>, vector<1x512xf32>
    tpu.vector_store %arg11[%c0_230, %c0_231], %319 {strides = array<i32>} : memref<1x512xf32, #tpu.memory_space<vmem>>, vector<1x512xf32>,
    return
  }
}

</mosaic_0001>

<bundles_post_ra>
// kernel: share_feature_forward.1
= control target key start
LH: loop header
LB: loop body
LE: loop exit
PB: predicated region body
PF: predicated region fallthrough
CT: control target
= control target key end

     0   :  { %v5091_v2 = vmov 0.0   ;;  %s5092_s21 = smov 16   ;;  %s5093_s26 = smov 17   ;;  %v50_v5 = vlaneseq  ;;  %vm126_vm2 = vcmask 64512   ;;  %s6075_s0 = inlined_call_operand.vmem [shape: f32[8,512], index: 0, kind: input, shape index: {}]   ;;  %s6076_s1 = inlined_call_operand.vmem [shape: f32[9,1,512], index: 1, kind: input, shape index: {}]   ;;  %s6077_s2 = inlined_call_operand.vmem [shape: f32[9,8,8], index: 2, kind: input, shape index: {}]   ;;  %s6078_s4 = inlined_call_operand.vmem [shape: f32[8,1], index: 4, kind: input, shape index: {}]   ;;  %s6079_s3 = inlined_call_operand.vmem [shape: f32[8,1], index: 3, kind: input, shape index: {}]   ;;  %s6080_s5 = inlined_call_operand.vmem [shape: f32[9,8,8], index: 5, kind: input, shape index: {}]   ;;  %s6081_s7 = inlined_call_operand.vmem [shape: f32[8,1], index: 7, kind: input, shape index: {}]   ;;  %s6082_s6 = inlined_call_operand.vmem [shape: f32[8,1], index: 6, kind: input, shape index: {}]   ;;  %s6083_s8 = inlined_call_operand.vmem [shape: f32[9,8,8], index: 8, kind: input, shape index: {}]   ;;  %s6084_s10 = inlined_call_operand.vmem [shape: f32[8,1], index: 10, kind: input, shape index: {}]   ;;  %s6085_s9 = inlined_call_operand.vmem [shape: f32[8,1], index: 9, kind: input, shape index: {}]   ;;  %s6086_s11 = inlined_call_operand.vmem [shape: f32[1,512], index: 11, kind: output, shape index: {}]  }
   0x1   :  { %v5165_v0 = vld [vmem:[%s6075_s0 + $0x18] sm:$0xff]  ;;  %v5170_v1 = vld [vmem:[%s6075_s0] sm:$0xff]  ;;  %194 = vmatprep.mubr.f32.mxu0 %v5091_v2  ;;  %265 = vmatprep.mubr.f32.mxu1 %v5091_v2  ;;  %v5181_v3 = vld [vmem:[%s6075_s0 + $0x10] sm:$0xff]  ;;  %s5095_s27 = smov 1   ;;  %s5096_s28 = smov 127  }
   0x2   :  { %90 = vrot.lane.b32.xlu1 %v5165_v0, %s5092_s21  ;;  %84 = vrot.lane.b32.xlu0 %v5170_v1, %s5092_s21  ;;  %v5186_v4 = vld [vmem:[%s6075_s0 + $0x8] sm:$0xff]  ;;  %s5094_s0 = smov 15   ;;  %s5097_s29 = smov 113   ;;  %v5249_v6 = vshrl.u32 %v50_v5, 7  ;;  %v5252_v7 = vand.u32 127, %v50_v5  ;;  %v83_v49 = vld [vmem:[%s6077_s2] sm:$0xff] }
   0x3   :  { %s5098_s30 = smov 112   ;;  %s5099_s12 = smov 111   ;;  %v4890_v14 = vld [vmem:[%s6076_s1 + $0x4] sm:$0xf]  ;;  %v57_v18 = vld [vmem:[%s6076_s1] sm:$0xf] }
   0x4   :  { %v5255_v8 = vsub.s32 3, %v5249_v6  ;;  %v5258_v9 = vsub.s32 1, %v5249_v6  ;;  %v5261_v10 = vsub.s32 2, %v5249_v6  ;;  %v5264_v11 = vsub.s32 0, %v5249_v6  ;;  %v4891_v31 = vld [vmem:[%s6077_s2 + $0x8] sm:$0xff] }
   0x5   :  { %vm92_vm0 = vcmp.lt.s32.totalorder %v5252_v7, 16  ;;  %vm52_vm1 = vcmp.lt.s32.totalorder %v5252_v7, 17  ;;  %v4896_v39 = vld [vmem:[%s6076_s1 + $0x8] sm:$0xf]  ;;  %vm425_vm3 = vcmp.lt.s32.totalorder %v5252_v7, 15  ;;  %vm616_vm4 = vcmp.lt.s32.totalorder %v5252_v7, 1 }
   0x6   :  { %88 = vrot.lane.b32.xlu1 %v5181_v3, %s5092_s21  ;;  %86 = vrot.lane.b32.xlu0 %v5186_v4, %s5092_s21  ;;  %v5271_v15 = vrot.slane %v4890_v14, %v5255_v8  ;;  %v5274_v16 = vrot.slane %v4890_v14, %v5258_v9  ;;  %v5277_v17 = vrot.slane %v4890_v14, %v5261_v10  ;;  %v4900_v57 = vld [vmem:[%s6076_s1 + $0xc] sm:$0xf]  ;;  %v4904_v63 = vld [vmem:[%s6076_s1 + $0x10] sm:$0xf]  ;;  %vm985_vm5 = vcmp.lt.s32.totalorder %v5252_v7, 127 }
   0x7   :  { %v5283_v19 = vrot.slane %v4890_v14, %v5264_v11  ;;  %v5297_v28 = vrot.slane %v57_v18, %v5258_v9  ;;  %v5307_v35 = vrot.slane %v57_v18, %v5261_v10  ;;  %v5313_v37 = vrot.slane %v57_v18, %v5264_v11 }
   0x8   :  { %v5316_v38 = vrot.slane %v57_v18, %v5255_v8  ;;  %v5334_v48 = vrot.slane %v4896_v39, %v5258_v9  ;;  %v5342_v53 = vrot.slane %v4896_v39, %v5261_v10  ;;  %v5348_v55 = vrot.slane %v4896_v39, %v5264_v11 }
   0x9   :  { %v5351_v56 = vrot.slane %v4896_v39, %v5255_v8  ;;  %v5372_v18 = vrot.slane %v4900_v57, %v5258_v9  ;;  %vm1176_vm6 = vcmp.lt.s32.totalorder %v5252_v7, 113  ;;  %vm1367_vm7 = vcmp.lt.s32.totalorder %v5252_v7, 112 }
   0xa   :  { %44 = vrot.lane.b32.xlu1 %v5186_v4, %s5093_s26  ;;  %42 = vrot.lane.b32.xlu0 %v5170_v1, %s5093_s26  ;;  %vm1558_vm8 = vcmp.lt.s32.totalorder %v5252_v7, 111  ;;  %v4973_v7 = vld [vmem:[%s6083_s8 + $0x40] sm:$0xff]  ;;  %vm4883_vm9 = vcmp.lt.s32.totalorder %v50_v5, 512 }
   0xe   :  { %46 = vrot.lane.b32.xlu1 %v5181_v3, %s5093_s26  ;;  %48 = vrot.lane.b32.xlu0 %v5165_v0, %s5093_s26 }
  0x12   :  { %419 = vrot.lane.b32.xlu1 %v5186_v4, %s5094_s0  ;;  %417 = vrot.lane.b32.xlu0 %v5170_v1, %s5094_s0 }
  0x16   :  { %421 = vrot.lane.b32.xlu1 %v5181_v3, %s5094_s0  ;;  %423 = vrot.lane.b32.xlu0 %v5165_v0, %s5094_s0 }
  0x1a   :  { %610 = vrot.lane.b32.xlu1 %v5186_v4, %s5095_s27  ;;  %608 = vrot.lane.b32.xlu0 %v5170_v1, %s5095_s27 }
  0x1e   :  { %612 = vrot.lane.b32.xlu1 %v5181_v3, %s5095_s27  ;;  %614 = vrot.lane.b32.xlu0 %v5165_v0, %s5095_s27 }
  0x22   :  { %979 = vrot.lane.b32.xlu0 %v5186_v4, %s5096_s28  ;;  %981 = vrot.lane.b32.xlu1 %v5181_v3, %s5096_s28 }
  0x26   :  { %977 = vrot.lane.b32.xlu0 %v5170_v1, %s5096_s28  ;;  %983 = vrot.lane.b32.xlu1 %v5165_v0, %s5096_s28 }
  0x2a   :  { %1170 = vrot.lane.b32.xlu0 %v5186_v4, %s5097_s29  ;;  %1172 = vrot.lane.b32.xlu1 %v5181_v3, %s5097_s29 }
  0x2e   :  { %1168 = vrot.lane.b32.xlu0 %v5170_v1, %s5097_s29  ;;  %1174 = vrot.lane.b32.xlu1 %v5165_v0, %s5097_s29 }
  0x32   :  { %1361 = vrot.lane.b32.xlu0 %v5186_v4, %s5098_s30  ;;  %1363 = vrot.lane.b32.xlu1 %v5181_v3, %s5098_s30 }
  0x36   :  { %1359 = vrot.lane.b32.xlu0 %v5170_v1, %s5098_s30  ;;  %1365 = vrot.lane.b32.xlu1 %v5165_v0, %s5098_s30 }
  0x3a   :  { %1552 = vrot.lane.b32.xlu0 %v5186_v4, %s5099_s12  ;;  %1554 = vrot.lane.b32.xlu1 %v5181_v3, %s5099_s12 }
  0x3e   :  { %1550 = vrot.lane.b32.xlu0 %v5170_v1, %s5099_s12  ;;  %1556 = vrot.lane.b32.xlu1 %v5165_v0, %s5099_s12 }
  0x74   :  { %v91_v12 = vpop.permute.xlu1 %90  ;;  %v85_v13 = vpop.permute.xlu0 %84 }
  0x75   :  { %v96_v22 = vsel %vm92_vm0, %v91_v12, %v85_v13 }
  0x76   :  { %v120_v30 = vmul.f32 %v5283_v19, %v96_v22 }
  0x78   :  { %v89_v20 = vpop.permute.xlu1 %88  ;;  %v87_v21 = vpop.permute.xlu0 %86 }
  0x79   :  { %v93_v23 = vsel %vm92_vm0, %v89_v20, %v91_v12  ;;  %v95_v24 = vsel %vm92_vm0, %v85_v13, %v87_v21  ;;  %v94_v25 = vsel %vm92_vm0, %v87_v21, %v89_v20  ;;  %v4897_v20 = vld [vmem:[%s6077_s2 + $0x10] sm:$0xff] }
  0x7a   :  { %v123_v26 = vmul.f32 %v5271_v15, %v93_v23  ;;  %v121_v27 = vmul.f32 %v5274_v16, %v95_v24  ;;  %v122_v29 = vmul.f32 %v5277_v17, %v94_v25  ;;  %v5378_v23 = vrot.slane %v4904_v63, %v5258_v9 }
  0x7b   :  { %v5383_v25 = vrot.slane %v4900_v57, %v5261_v10 }
  0x7c   :  { %201 = vmatprep.subr.mxu1 %v123_v26  ;;  %v45_v32 = vpop.permute.xlu1 %44  ;;  %130 = vmatprep.subr.mxu0 %v121_v27  ;;  %v43_v33 = vpop.permute.xlu0 %42  ;;  %v5389_v27 = vrot.slane %v4900_v57, %v5264_v11 }
  0x7d   :  { %v55_v34 = vsel %vm52_vm1, %v43_v33, %v45_v32  ;;  %131 = vmatpush1.msra.mxu0 %v120_v30  ;;  %202 = vmatpush1.msra.mxu1 %v122_v29  ;;  %v5392_v29 = vrot.slane %v4900_v57, %v5255_v8  ;;  %v4908_v30 = vld [vmem:[%s6076_s1 + $0x14] sm:$0xf] }
  0x7e   :  { %v80_v36 = vmul.f32 %v5297_v28, %v55_v34  ;;  %4892 = vmatmul.mubr.msk.f32.vlgmr.msra.gmra.mrb[0].mxu0 %vm126_vm2, %v4891_v31  ;;  %4893 = vmatmul.mubr.msk.f32.vlgmr.msra.gmra.mrb[0].mxu1 %vm126_vm2, %v4891_v31  ;;  %v5400_v31 = vrot.slane %v4904_v63, %v5255_v8  ;;  %v823_v34 = vmul.f32 %v5378_v23, %v5186_v4 }
  0x7f   :  { %339 = vmatprep.mubr.f32.mxu0 %v5091_v2  ;;  %410 = vmatprep.mubr.f32.mxu1 %v5091_v2  ;;  %v5438_v57 = vrot.slane %v4908_v30, %v5255_v8 }
  0x80   :  { %v47_v40 = vpop.permute.xlu1 %46  ;;  %v49_v41 = vpop.permute.xlu0 %48  ;;  %275 = vmatprep.subr.mxu0 %v80_v36  ;;  %v5406_v36 = vrot.slane %v4904_v63, %v5261_v10 }
  0x81   :  { %v54_v42 = vsel %vm52_vm1, %v45_v32, %v47_v40  ;;  %v53_v43 = vsel %vm52_vm1, %v47_v40, %v49_v41  ;;  %v56_v44 = vsel %vm52_vm1, %v49_v41, %v43_v33 }
  0x82   :  { %v81_v45 = vmul.f32 %v5307_v35, %v54_v42  ;;  %v79_v46 = vmul.f32 %v5313_v37, %v56_v44  ;;  %v82_v47 = vmul.f32 %v5316_v38, %v53_v43  ;;  %v5415_v42 = vrot.slane %v4904_v63, %v5264_v11 }
  0x84   :  { %v420_v50 = vpop.permute.xlu1 %419  ;;  %276 = vmatpush1.msra.mxu0 %v79_v46  ;;  %346 = vmatprep.subr.mxu1 %v82_v47  ;;  %v418_v51 = vpop.permute.xlu0 %417  ;;  %v4901_v46 = vld [vmem:[%s6077_s2 + $0x18] sm:$0xff]  ;;  %v825_v47 = vmul.f32 %v5400_v31, %v5165_v0 }
  0x85   :  { %v428_v52 = vsel %vm425_vm3, %v418_v51, %v420_v50  ;;  %347 = vmatpush1.msra.mxu1 %v81_v45  ;;  %v5421_v45 = vrot.slane %v4908_v30, %v5258_v9 }
  0x86   :  { %v454_v54 = vmul.f32 %v5334_v48, %v428_v52  ;;  %4894 = vmatmul.mubr.msk.f32.vlgmr.msra.gmra.mrb[0].mxu0 %vm126_vm2, %v83_v49  ;;  %4895 = vmatmul.mubr.msk.f32.vlgmr.msra.gmra.mrb[0].mxu1 %vm126_vm2, %v83_v49 }
  0x87   :  { %526 = vmatprep.mubr.f32.mxu0 %v5091_v2  ;;  %597 = vmatprep.mubr.f32.mxu1 %v5091_v2 }
  0x88   :  { %v422_v58 = vpop.permute.xlu1 %421  ;;  %v424_v59 = vpop.permute.xlu0 %423  ;;  %462 = vmatprep.subr.mxu0 %v454_v54  ;;  %v822_v54 = vmul.f32 %v5415_v42, %v5170_v1  ;;  %v4912_v1 = vld [vmem:[%s6076_s1 + $0x18] sm:$0xf] }
  0x89   :  { %v427_v60 = vsel %vm425_vm3, %v420_v50, %v422_v58  ;;  %v426_v61 = vsel %vm425_vm3, %v422_v58, %v424_v59  ;;  %v429_v62 = vsel %vm425_vm3, %v424_v59, %v418_v51  ;;  %v824_v51 = vmul.f32 %v5406_v36, %v5181_v3 }
  0x8a   :  { %v455_v12 = vmul.f32 %v5342_v53, %v427_v60  ;;  %v453_v13 = vmul.f32 %v5348_v55, %v429_v62  ;;  %v456_v14 = vmul.f32 %v5351_v56, %v426_v61  ;;  %v5442_v3 = vrot.slane %v4908_v30, %v5264_v11 }
  0x8b   :  { %v5445_v58 = vrot.slane %v4908_v30, %v5261_v10 }
  0x8c   :  { %v611_v21 = vpop.permute.xlu1 %610  ;;  %463 = vmatpush1.msra.mxu0 %v453_v13  ;;  %533 = vmatprep.subr.mxu1 %v456_v14  ;;  %v609_v22 = vpop.permute.xlu0 %608  ;;  %v5460_v13 = vrot.slane %v4912_v1, %v5258_v9 }
  0x8d   :  { %v619_v24 = vsel %vm616_vm4, %v609_v22, %v611_v21  ;;  %534 = vmatpush1.msra.mxu1 %v455_v12 }
  0x8e   :  { %v645_v26 = vmul.f32 %v5372_v18, %v619_v24  ;;  %4898 = vmatmul.mubr.msk.f32.vlgmr.msra.gmra.mrb[0].mxu0 %vm126_vm2, %v4897_v20  ;;  %4899 = vmatmul.mubr.msk.f32.vlgmr.msra.gmra.mrb[0].mxu1 %vm126_vm2, %v4897_v20 }
  0x8f   :  { %717 = vmatprep.mubr.f32.mxu0 %v5091_v2  ;;  %788 = vmatprep.mubr.f32.mxu1 %v5091_v2 }
  0x90   :  { %v613_v32 = vpop.permute.xlu1 %612  ;;  %v615_v33 = vpop.permute.xlu0 %614  ;;  %653 = vmatprep.subr.mxu0 %v645_v26 }
  0x91   :  { %v618_v39 = vsel %vm616_vm4, %v611_v21, %v613_v32  ;;  %v617_v40 = vsel %vm616_vm4, %v613_v32, %v615_v33  ;;  %v620_v41 = vsel %vm616_vm4, %v615_v33, %v609_v22  ;;  %v4905_v21 = vld [vmem:[%s6077_s2 + $0x20] sm:$0xff]  ;;  %v5473_v32 = vrot.slane %v4912_v1, %v5255_v8 }
  0x92   :  { %v646_v43 = vmul.f32 %v5383_v25, %v618_v39  ;;  %v644_v44 = vmul.f32 %v5389_v27, %v620_v41  ;;  %v647_v4 = vmul.f32 %v5392_v29, %v617_v40  ;;  %v5476_v33 = vrot.slane %v4912_v1, %v5264_v11  ;;  %v4916_v39 = vld [vmem:[%s6076_s1 + $0x1c] sm:$0xf] }
  0x94   :  { %654 = vmatpush1.msra.mxu0 %v644_v44  ;;  %724 = vmatprep.subr.mxu1 %v647_v4  ;;  %v980_v49 = vpop.permute.xlu0 %979  ;;  %v982_v50 = vpop.permute.xlu1 %981 }
  0x95   :  { %725 = vmatpush1.msra.mxu1 %v646_v43  ;;  %v987_v52 = vsel %vm985_vm5, %v980_v49, %v982_v50  ;;  %831 = vmatprep.subr.mxu0 %v823_v34  ;;  %v5479_v34 = vrot.slane %v4912_v1, %v5261_v10 }
  0x96   :  { %4902 = vmatmul.mubr.msk.f32.vlgmr.msra.gmra.mrb[0].mxu0 %vm126_vm2, %v4901_v46  ;;  %4903 = vmatmul.mubr.msk.f32.vlgmr.msra.gmra.mrb[0].mxu1 %vm126_vm2, %v4901_v46  ;;  %v1014_v0 = vmul.f32 %v5421_v45, %v987_v52 }
  0x97   :  { %902 = vmatprep.subr.mxu1 %v825_v47  ;;  %895 = vmatprep.mubr.f32.mxu0 %v5091_v2  ;;  %v5495_v47 = vrot.slane %v4916_v39, %v5258_v9 }
  0x98   :  { %903 = vmatpush1.msra.mxu1 %v824_v51  ;;  %966 = vmatprep.mubr.f32.mxu1 %v5091_v2  ;;  %v978_v59 = vpop.permute.xlu0 %977  ;;  %v984_v60 = vpop.permute.xlu1 %983  ;;  %v4909_v51 = vld [vmem:[%s6077_s2 + $0x28] sm:$0xff] }
  0x99   :  { %v988_v61 = vsel %vm985_vm5, %v978_v59, %v980_v49  ;;  %832 = vmatpush1.msra.mxu0 %v822_v54  ;;  %v986_v62 = vsel %vm985_vm5, %v982_v50, %v984_v60  ;;  %v989_v63 = vsel %vm985_vm5, %v984_v60, %v978_v59  ;;  %v5508_v59 = vrot.slane %v4916_v39, %v5255_v8 }
  0x9a   :  { %v1016_v12 = vmul.f32 %v5438_v57, %v989_v63  ;;  %1022 = vmatprep.subr.mxu0 %v1014_v0  ;;  %v1013_v14 = vmul.f32 %v5442_v3, %v988_v61  ;;  %v1015_v20 = vmul.f32 %v5445_v58, %v986_v62  ;;  %v5511_v60 = vrot.slane %v4916_v39, %v5264_v11  ;;  %v4920_v62 = vld [vmem:[%s6076_s1 + $0x20] sm:$0xf] }
  0x9b   :  { %v5514_v61 = vrot.slane %v4916_v39, %v5261_v10  ;;  %v4913_v39 = vld [vmem:[%s6077_s2 + $0x30] sm:$0xff] }
  0x9c   :  { %v1171_v22 = vpop.permute.xlu0 %1170  ;;  %v1173_v24 = vpop.permute.xlu1 %1172  ;;  %1093 = vmatprep.subr.mxu1 %v1016_v12 }
  0x9d   :  { %v1178_v26 = vsel %vm1176_vm6, %v1171_v22, %v1173_v24 }
  0x9e   :  { %4906 = vmatmul.mubr.msk.f32.vlgmr.msra.gmra.mrb[0].mxu0 %vm126_vm2, %v4905_v21  ;;  %4907 = vmatmul.mubr.msk.f32.vlgmr.msra.gmra.mrb[0].mxu1 %vm126_vm2, %v4905_v21  ;;  %v1205_v30 = vmul.f32 %v5460_v13, %v1178_v26 }
  0x9f   :  { %1023 = vmatpush1.msra.mxu0 %v1013_v14  ;;  %1094 = vmatpush1.msra.mxu1 %v1015_v20 }
  0xa0   :  { %1157 = vmatprep.mubr.f32.mxu1 %v5091_v2  ;;  %v1169_v40 = vpop.permute.xlu0 %1168  ;;  %1086 = vmatprep.mubr.f32.mxu0 %v5091_v2  ;;  %v1175_v41 = vpop.permute.xlu1 %1174 }
  0xa1   :  { %v1179_v43 = vsel %vm1176_vm6, %v1169_v40, %v1171_v22  ;;  %v1177_v44 = vsel %vm1176_vm6, %v1173_v24, %v1175_v41  ;;  %v1180_v4 = vsel %vm1176_vm6, %v1175_v41, %v1169_v40  ;;  %1213 = vmatprep.subr.mxu0 %v1205_v30  ;;  %v5530_v24 = vrot.slane %v4920_v62, %v5258_v9 }
  0xa2   :  { %v1207_v46 = vmul.f32 %v5473_v32, %v1180_v4  ;;  %v1204_v49 = vmul.f32 %v5476_v33, %v1179_v43  ;;  %v1206_v50 = vmul.f32 %v5479_v34, %v1177_v44  ;;  %v5543_v44 = vrot.slane %v4920_v62, %v5255_v8 }
  0xa3   :  { %v5546_v4 = vrot.slane %v4920_v62, %v5264_v11 }
  0xa4   :  { %v1362_v52 = vpop.permute.xlu0 %1361  ;;  %v1364_v54 = vpop.permute.xlu1 %1363  ;;  %1284 = vmatprep.subr.mxu1 %v1207_v46  ;;  %v5549_v46 = vrot.slane %v4920_v62, %v5261_v10 }
  0xa5   :  { %v1369_v0 = vsel %vm1367_vm7, %v1362_v52, %v1364_v54 }
  0xa6   :  { %4910 = vmatmul.mubr.msk.f32.vlgmr.msra.gmra.mrb[0].mxu0 %vm126_vm2, %v4909_v51  ;;  %4911 = vmatmul.mubr.msk.f32.vlgmr.msra.gmra.mrb[0].mxu1 %vm126_vm2, %v4909_v51  ;;  %v1396_v1 = vmul.f32 %v5495_v47, %v1369_v0  ;;  %v4917_v0 = vld [vmem:[%s6077_s2 + $0x38] sm:$0xff] }
  0xa7   :  { %1214 = vmatpush1.msra.mxu0 %v1204_v49  ;;  %1285 = vmatpush1.msra.mxu1 %v1206_v50 }
  0xa8   :  { %1348 = vmatprep.mubr.f32.mxu1 %v5091_v2  ;;  %v1360_v63 = vpop.permute.xlu0 %1359  ;;  %1277 = vmatprep.mubr.f32.mxu0 %v5091_v2  ;;  %v1366_v12 = vpop.permute.xlu1 %1365 }
  0xa9   :  { %v1370_v14 = vsel %vm1367_vm7, %v1360_v63, %v1362_v52  ;;  %v1368_v20 = vsel %vm1367_vm7, %v1364_v54, %v1366_v12  ;;  %v1371_v21 = vsel %vm1367_vm7, %v1366_v12, %v1360_v63  ;;  %1404 = vmatprep.subr.mxu0 %v1396_v1  ;;  %v4921_v1 = vld [vmem:[%s6077_s2 + $0x40] sm:$0xff] }
  0xaa   :  { %v1398_v22 = vmul.f32 %v5508_v59, %v1371_v21  ;;  %v1395_v26 = vmul.f32 %v5511_v60, %v1370_v14  ;;  %v1397_v30 = vmul.f32 %v5514_v61, %v1368_v20 }
  0xac   :  { %v1553_v40 = vpop.permute.xlu0 %1552  ;;  %v1555_v41 = vpop.permute.xlu1 %1554  ;;  %1475 = vmatprep.subr.mxu1 %v1398_v22 }
  0xad   :  { %v1560_v43 = vsel %vm1558_vm8, %v1553_v40, %v1555_v41 }
  0xae   :  { %4914 = vmatmul.mubr.msk.f32.vlgmr.msra.gmra.mrb[0].mxu0 %vm126_vm2, %v4913_v39  ;;  %4915 = vmatmul.mubr.msk.f32.vlgmr.msra.gmra.mrb[0].mxu1 %vm126_vm2, %v4913_v39  ;;  %v1587_v9 = vmul.f32 %v5530_v24, %v1560_v43 }
  0xaf   :  { %1405 = vmatpush1.msra.mxu0 %v1395_v26  ;;  %1476 = vmatpush1.msra.mxu1 %v1397_v30 }
  0xb0   :  { %1539 = vmatprep.mubr.f32.mxu1 %v5091_v2  ;;  %v1551_v49 = vpop.permute.xlu0 %1550  ;;  %1468 = vmatprep.mubr.f32.mxu0 %v5091_v2  ;;  %v1557_v50 = vpop.permute.xlu1 %1556 }
  0xb1   :  { %v1561_v51 = vsel %vm1558_vm8, %v1551_v49, %v1553_v40  ;;  %v1559_v8 = vsel %vm1558_vm8, %v1555_v41, %v1557_v50  ;;  %v1562_v52 = vsel %vm1558_vm8, %v1557_v50, %v1551_v49  ;;  %1595 = vmatprep.subr.mxu0 %v1587_v9  ;;  %v5100_v49 = vmov 0   ;;  %v1776_v50 = vld [vmem:[%s6078_s4] sm:$0xff] }
  0xb2   :  { %v1589_v11 = vmul.f32 %v5543_v44, %v1562_v52  ;;  %v1586_v10 = vmul.f32 %v5546_v4, %v1561_v51  ;;  %v1588_v54 = vmul.f32 %v5549_v46, %v1559_v8  ;;  %5083 = vset.pattern.permute.xlu0 %v5100_v49  ;;  %5084 = vset.pattern.permute.xlu1 %v5100_v49 }
  0xb4   :  { %1666 = vmatprep.subr.mxu1 %v1589_v11 }
  0xb6   :  { %4918 = vmatmul.mubr.msk.f32.vlgmr.msra.gmra.mrb[0].mxu0 %vm126_vm2, %v4917_v0  ;;  %4919 = vmatmul.mubr.msk.f32.vlgmr.msra.gmra.mrb[0].mxu1 %vm126_vm2, %v4917_v0 }
  0xb7   :  { %1596 = vmatpush1.msra.mxu0 %v1586_v10  ;;  %1667 = vmatpush1.msra.mxu1 %v1588_v54 }
  0xb8   :  { %1659 = vmatprep.mubr.f32.mxu0 %v5091_v2  ;;  %1730 = vmatprep.mubr.f32.mxu1 %v5091_v2 }
  0xbe   :  { %4922 = vmatmul.mubr.msk.f32.vlgmr.msra.gmra.mrb[0].mxu0 %vm126_vm2, %v4921_v1  ;;  %4923 = vmatmul.mubr.msk.f32.vlgmr.msra.gmra.mrb[0].mxu1 %vm126_vm2, %v4921_v1 }
  0xbf   :  { %1892 = vmatprep.mubr.f32.mxu0 %v5091_v2  ;;  %1963 = vmatprep.mubr.f32.mxu1 %v5091_v2 }
 0x191   :  { %v1661_v62 = vpop.f32.mrb[0].mxu0  ;;  %v1732_v63 = vpop.f32.mrb[0].mxu1 }
 0x192   :  { %v1747_v12 = vmul.f32 %v1661_v62, %v1661_v62  ;;  %v1663_v14 = vpop.f32.mrb[1].mxu0  ;;  %v1734_v20 = vpop.f32.mrb[1].mxu1  ;;  %v1749_v26 = vmul.f32 %v1732_v63, %v1732_v63 }
 0x193   :  { %v1741_v21 = vadd.f32 %v1663_v14, %v1661_v62  ;;  %v1748_v22 = vmul.f32 %v1663_v14, %v1663_v14  ;;  %v1750_v41 = vmul.f32 %v1734_v20, %v1734_v20 }
 0x195   :  { %v1742_v30 = vadd.f32 %v1741_v21, %v1732_v63  ;;  %v1751_v39 = vadd.f32 %v1748_v22, %v1747_v12 }
 0x197   :  { %v1743_v40 = vadd.f32 %v1742_v30, %v1734_v20  ;;  %v1752_v43 = vadd.f32 %v1751_v39, %v1749_v26  ;;  %v1761_v26 = vld [vmem:[%s6079_s3] sm:$0xff] }
 0x199   :  { %1744 = vadd.xlane.f32.xlu0 %v1743_v40  ;;  %v1753_v9 = vadd.f32 %v1752_v43, %v1750_v41 }
 0x19b   :  { %1754 = vadd.xlane.f32.xlu1 %v1753_v9 }
 0x1ac   :  { %1779 = vperm.xlu1 %5084, %v1776_v50  }
 0x226   :  { %v1745_v51 = vpop.xlane.xlu0 %1744 }
 0x227   :  { %v1746_v8 = vmul.f32 0.001953125, %v1745_v51 }
 0x228   :  { %v1755_v52 = vpop.xlane.xlu1 %1754 }
 0x229   :  { %v1756_v11 = vmul.f32 0.001953125, %v1755_v52  ;;  %v1757_v10 = vmul.f32 %v1746_v8, %v1746_v8  ;;  %v1763_v54 = vsub.f32 %v1661_v62, %v1746_v8  ;;  %v1764_v0 = vsub.f32 %v1663_v14, %v1746_v8 }
 0x22a   :  { %v1765_v1 = vsub.f32 %v1732_v63, %v1746_v8  ;;  %v1766_v12 = vsub.f32 %v1734_v20, %v1746_v8 }
 0x22b   :  { %v1758_v21 = vsub.f32 %v1756_v11, %v1757_v10 }
 0x22c   :  { %v1780_v41 = vpop.permute.xlu1 %1779 }
 0x22d   :  { %v1759_v22 = vadd.f32 1e-05, %v1758_v21 }
 0x22f   :  { %5085 = vrsqrt.f32 %v1759_v22 }
 0x239   :  { %v5086_v30 = vpop.eup %5085 }
 0x23a   :  { %v1762_v39 = vmul.f32 %v5086_v30, %v1761_v26 }
 0x23c   :  { %1769 = vperm.xlu0 %5083, %v1762_v39  }
 0x2bb   :  { %v1770_v40 = vpop.permute.xlu0 %1769 }
 0x2bc   :  { %v1772_v43 = vmul.f32 %v1770_v40, %v1763_v54  ;;  %v1773_v9 = vmul.f32 %v1770_v40, %v1764_v0  ;;  %v1775_v49 = vmul.f32 %v1770_v40, %v1766_v12  ;;  %v1774_v51 = vmul.f32 %v1770_v40, %v1765_v1  ;;  %v4924_v40 = vld [vmem:[%s6080_s5 + $0x8] sm:$0xff] }
 0x2be   :  { %v1782_v50 = vadd.f32 %v1780_v41, %v1772_v43  ;;  %v1785_v62 = vadd.f32 %v1780_v41, %v1775_v49  ;;  %v1783_v14 = vadd.f32 %v1780_v41, %v1773_v9  ;;  %v1784_v52 = vadd.f32 %v1780_v41, %v1774_v51 }
 0x2c0   :  { %v5582_v63 = vmax.f32 %v1782_v50, 0.0  ;;  %v5584_v20 = vmax.f32 %v1785_v62, 0.0  ;;  %v5590_v8 = vmax.f32 %v1783_v14, 0.0  ;;  %v5600_v11 = vmax.f32 %v1784_v52, 0.0 }
 0x2c2   :  { %1796 = vrot.lane.b32.xlu0 %v5584_v20, %s5093_s26  ;;  %1807 = vrot.lane.b32.xlu1 %v5582_v63, %s5092_s21 }
 0x2c6   :  { %2115 = vrot.lane.b32.xlu0 %v5582_v63, %s5094_s0  ;;  %1809 = vrot.lane.b32.xlu1 %v5590_v8, %s5092_s21 }
 0x2ca   :  { %2121 = vrot.lane.b32.xlu0 %v5584_v20, %s5094_s0  ;;  %1813 = vrot.lane.b32.xlu1 %v5584_v20, %s5092_s21 }
 0x2ce   :  { %2282 = vrot.lane.b32.xlu0 %v5582_v63, %s5095_s27  ;;  %1811 = vrot.lane.b32.xlu1 %v5600_v11, %s5092_s21 }
 0x2d2   :  { %2288 = vrot.lane.b32.xlu0 %v5584_v20, %s5095_s27  ;;  %1790 = vrot.lane.b32.xlu1 %v5582_v63, %s5093_s26 }
 0x2d6   :  { %2606 = vrot.lane.b32.xlu0 %v5590_v8, %s5096_s28  ;;  %1792 = vrot.lane.b32.xlu1 %v5590_v8, %s5093_s26 }
 0x2da   :  { %2604 = vrot.lane.b32.xlu0 %v5582_v63, %s5096_s28  ;;  %1794 = vrot.lane.b32.xlu1 %v5600_v11, %s5093_s26 }
 0x2de   :  { %2773 = vrot.lane.b32.xlu0 %v5590_v8, %s5097_s29  ;;  %2117 = vrot.lane.b32.xlu1 %v5590_v8, %s5094_s0 }
 0x2e2   :  { %2771 = vrot.lane.b32.xlu0 %v5582_v63, %s5097_s29  ;;  %2119 = vrot.lane.b32.xlu1 %v5600_v11, %s5094_s0 }
 0x2e6   :  { %2940 = vrot.lane.b32.xlu0 %v5590_v8, %s5098_s30  ;;  %2284 = vrot.lane.b32.xlu1 %v5590_v8, %s5095_s27 }
 0x2ea   :  { %2938 = vrot.lane.b32.xlu0 %v5582_v63, %s5098_s30  ;;  %2286 = vrot.lane.b32.xlu1 %v5600_v11, %s5095_s27 }
 0x2ee   :  { %3107 = vrot.lane.b32.xlu0 %v5590_v8, %s5099_s12  ;;  %2608 = vrot.lane.b32.xlu1 %v5600_v11, %s5096_s28 }
 0x2f2   :  { %3105 = vrot.lane.b32.xlu0 %v5582_v63, %s5099_s12  ;;  %2610 = vrot.lane.b32.xlu1 %v5584_v20, %s5096_s28 }
 0x2f6   :  { %2775 = vrot.lane.b32.xlu1 %v5600_v11, %s5097_s29 }
 0x2fa   :  { %2777 = vrot.lane.b32.xlu1 %v5584_v20, %s5097_s29 }
 0x2fe   :  { %2942 = vrot.lane.b32.xlu1 %v5600_v11, %s5098_s30 }
 0x302   :  { %2944 = vrot.lane.b32.xlu1 %v5584_v20, %s5098_s30 }
 0x306   :  { %3109 = vrot.lane.b32.xlu1 %v5600_v11, %s5099_s12 }
 0x30a   :  { %3111 = vrot.lane.b32.xlu1 %v5584_v20, %s5099_s12 }
 0x334   :  { %v1797_v10 = vpop.permute.xlu0 %1796  ;;  %v1808_v54 = vpop.permute.xlu1 %1807 }
 0x338   :  { %v2116_v0 = vpop.permute.xlu0 %2115  ;;  %v1810_v1 = vpop.permute.xlu1 %1809 }
 0x339   :  { %v1817_v12 = vsel %vm92_vm0, %v1808_v54, %v1810_v1 }
 0x33a   :  { %v1820_v21 = vmul.f32 %v1817_v12, %v5274_v16 }
 0x33c   :  { %v2122_v22 = vpop.permute.xlu0 %2121  ;;  %1828 = vmatprep.subr.mxu0 %v1820_v21  ;;  %v1814_v26 = vpop.permute.xlu1 %1813 }
 0x33d   :  { %v1818_v30 = vsel %vm92_vm0, %v1814_v26, %v1808_v54 }
 0x33e   :  { %v1819_v39 = vmul.f32 %v1818_v30, %v5283_v19 }
 0x340   :  { %1829 = vmatpush1.msra.mxu0 %v1819_v39  ;;  %v1812_v41 = vpop.permute.xlu1 %1811  ;;  %v2283_v43 = vpop.permute.xlu0 %2282 }
 0x341   :  { %v1815_v9 = vsel %vm92_vm0, %v1812_v41, %v1814_v26  ;;  %v1816_v49 = vsel %vm92_vm0, %v1810_v1, %v1812_v41  ;;  %4925 = vmatmul.mubr.msk.f32.vlgmr.msra.gmra.mrb[2].mxu0 %vm126_vm2, %v4924_v40  ;;  %v1806_v26 = vld [vmem:[%s6080_s5] sm:$0xff] }
 0x342   :  { %v1821_v50 = vmul.f32 %v1816_v49, %v5277_v17  ;;  %v1822_v62 = vmul.f32 %v1815_v9, %v5271_v15  ;;  %2037 = vmatprep.mubr.f32.mxu0 %v5091_v2 }
 0x344   :  { %1899 = vmatprep.subr.mxu1 %v1822_v62  ;;  %v1791_v14 = vpop.permute.xlu1 %1790  ;;  %v2289_v51 = vpop.permute.xlu0 %2288 }
 0x345   :  { %1900 = vmatpush1.msra.mxu1 %v1821_v50  ;;  %v1801_v52 = vsel %vm52_vm1, %v1797_v10, %v1791_v14  ;;  %v2126_v50 = vsel %vm425_vm3, %v2122_v22, %v2116_v0 }
 0x346   :  { %4926 = vmatmul.mubr.msk.f32.vlgmr.msra.gmra.mrb[2].mxu1 %vm126_vm2, %v4924_v40  ;;  %v1802_v21 = vmul.f32 %v1801_v52, %v5313_v37  ;;  %v2127_v52 = vmul.f32 %v2126_v50, %v5348_v55 }
 0x347   :  { %2108 = vmatprep.mubr.f32.mxu1 %v5091_v2 }
 0x348   :  { %v1793_v54 = vpop.permute.xlu1 %1792  ;;  %v2607_v39 = vpop.permute.xlu0 %2606 }
 0x349   :  { %v1800_v1 = vsel %vm52_vm1, %v1791_v14, %v1793_v54 }
 0x34a   :  { %v1803_v12 = vmul.f32 %v1800_v1, %v5297_v28  ;;  %v4929_v1 = vld [vmem:[%s6080_s5 + $0x10] sm:$0xff] }
 0x34c   :  { %1973 = vmatprep.subr.mxu0 %v1803_v12  ;;  %v1795_v30 = vpop.permute.xlu1 %1794 }
 0x34d   :  { %v1798_v40 = vsel %vm52_vm1, %v1795_v30, %v1797_v10  ;;  %v1799_v41 = vsel %vm52_vm1, %v1793_v54, %v1795_v30  ;;  %1974 = vmatpush1.msra.mxu0 %v1802_v21  ;;  %v2605_v54 = vpop.permute.xlu0 %2604 }
 0x34e   :  { %v1804_v9 = vmul.f32 %v1799_v41, %v5307_v35  ;;  %v1805_v49 = vmul.f32 %v1798_v40, %v5316_v38  ;;  %4927 = vmatmul.mubr.msk.f32.vlgmr.msra.gmra.mrb[2].mxu0 %vm126_vm2, %v1806_v26  ;;  %v2293_v40 = vsel %vm616_vm4, %v2289_v51, %v2283_v43 }
 0x34f   :  { %2200 = vmatprep.mubr.f32.mxu0 %v5091_v2  ;;  %v2294_v50 = vmul.f32 %v2293_v40, %v5389_v27 }
 0x350   :  { %2044 = vmatprep.subr.mxu1 %v1805_v49  ;;  %v2118_v62 = vpop.permute.xlu1 %2117 }
 0x351   :  { %v2125_v10 = vsel %vm425_vm3, %v2116_v0, %v2118_v62  ;;  %2045 = vmatpush1.msra.mxu1 %v1804_v9  ;;  %v2774_v9 = vpop.permute.xlu0 %2773 }
 0x352   :  { %v2128_v14 = vmul.f32 %v2125_v10, %v5334_v48  ;;  %4928 = vmatmul.mubr.msk.f32.vlgmr.msra.gmra.mrb[2].mxu1 %vm126_vm2, %v1806_v26 }
 0x353   :  { %2271 = vmatprep.mubr.f32.mxu1 %v5091_v2 }
 0x354   :  { %2136 = vmatprep.subr.mxu0 %v2128_v14  ;;  %v2120_v12 = vpop.permute.xlu1 %2119  ;;  %v2450_v14 = vmul.f32 %v5590_v8, %v5378_v23 }
 0x355   :  { %v2123_v21 = vsel %vm425_vm3, %v2120_v12, %v2122_v22  ;;  %v2124_v0 = vsel %vm425_vm3, %v2118_v62, %v2120_v12  ;;  %2137 = vmatpush1.msra.mxu0 %v2127_v52  ;;  %v4932_v62 = vld [vmem:[%s6080_s5 + $0x18] sm:$0xff] }
 0x356   :  { %v2129_v26 = vmul.f32 %v2124_v0, %v5342_v53  ;;  %v2130_v30 = vmul.f32 %v2123_v21, %v5351_v56  ;;  %4930 = vmatmul.mubr.msk.f32.vlgmr.msra.gmra.mrb[2].mxu0 %vm126_vm2, %v4929_v1  ;;  %v2772_v0 = vpop.permute.xlu0 %2771 }
 0x357   :  { %2367 = vmatprep.mubr.f32.mxu0 %v5091_v2 }
 0x358   :  { %2207 = vmatprep.subr.mxu1 %v2130_v30  ;;  %v2285_v41 = vpop.permute.xlu1 %2284  ;;  %v2614_v30 = vsel %vm985_vm5, %v2605_v54, %v2607_v39 }
 0x359   :  { %v2292_v22 = vsel %vm616_vm4, %v2283_v43, %v2285_v41  ;;  %2208 = vmatpush1.msra.mxu1 %v2129_v26 }
 0x35a   :  { %v2295_v49 = vmul.f32 %v2292_v22, %v5372_v18  ;;  %4931 = vmatmul.mubr.msk.f32.vlgmr.msra.gmra.mrb[2].mxu1 %vm126_vm2, %v4929_v1  ;;  %v2449_v1 = vmul.f32 %v5582_v63, %v5415_v42  ;;  %v2451_v63 = vmul.f32 %v5600_v11, %v5406_v36  ;;  %v2616_v22 = vmul.f32 %v2614_v30, %v5442_v3  ;;  %v2941_v11 = vpop.permute.xlu0 %2940 }
 0x35b   :  { %2438 = vmatprep.mubr.f32.mxu1 %v5091_v2 }
 0x35c   :  { %2303 = vmatprep.subr.mxu0 %v2295_v49  ;;  %v2287_v10 = vpop.permute.xlu1 %2286 }
 0x35d   :  { %v2290_v43 = vsel %vm616_vm4, %v2287_v10, %v2289_v51  ;;  %v2291_v52 = vsel %vm616_vm4, %v2285_v41, %v2287_v10  ;;  %2304 = vmatpush1.msra.mxu0 %v2294_v50  ;;  %v2452_v51 = vmul.f32 %v5584_v20, %v5400_v31  ;;  %v4935_v20 = vld [vmem:[%s6080_s5 + $0x20] sm:$0xff] }
 0x35e   :  { %v2296_v12 = vmul.f32 %v2291_v52, %v5383_v25  ;;  %v2297_v21 = vmul.f32 %v2290_v43, %v5392_v29  ;;  %4933 = vmatmul.mubr.msk.f32.vlgmr.msra.gmra.mrb[2].mxu0 %vm126_vm2, %v4932_v62  ;;  %2458 = vmatprep.subr.mxu0 %v2450_v14  ;;  %v2939_v52 = vpop.permute.xlu0 %2938 }
 0x35f   :  { %2459 = vmatpush1.msra.mxu0 %v2449_v1  ;;  %2522 = vmatprep.mubr.f32.mxu0 %v5091_v2  ;;  %v4938_v1 = vld [vmem:[%s6080_s5 + $0x28] sm:$0xff] }
 0x360   :  { %2374 = vmatprep.subr.mxu1 %v2297_v21  ;;  %v2609_v8 = vpop.permute.xlu1 %2608 }
 0x361   :  { %v2613_v26 = vsel %vm985_vm5, %v2607_v39, %v2609_v8  ;;  %2375 = vmatpush1.msra.mxu1 %v2296_v12 }
 0x362   :  { %v2617_v40 = vmul.f32 %v2613_v26, %v5421_v45  ;;  %4934 = vmatmul.mubr.msk.f32.vlgmr.msra.gmra.mrb[2].mxu1 %vm126_vm2, %v4932_v62  ;;  %2529 = vmatprep.subr.mxu1 %v2452_v51 }
 0x363   :  { %2530 = vmatpush1.msra.mxu1 %v2451_v63  ;;  %2593 = vmatprep.mubr.f32.mxu1 %v5091_v2  ;;  %v3108_v63 = vpop.permute.xlu0 %3107 }
 0x364   :  { %v2611_v41 = vpop.permute.xlu1 %2610  ;;  %2625 = vmatprep.subr.mxu0 %v2617_v40 }
 0x365   :  { %v2615_v39 = vsel %vm985_vm5, %v2611_v41, %v2605_v54  ;;  %v2612_v49 = vsel %vm985_vm5, %v2609_v8, %v2611_v41  ;;  %v2781_v54 = vsel %vm1176_vm6, %v2772_v0, %v2774_v9  ;;  %v4941_v41 = vld [vmem:[%s6080_s5 + $0x30] sm:$0xff] }
 0x366   :  { %v2619_v50 = vmul.f32 %v2615_v39, %v5438_v57  ;;  %4936 = vmatmul.mubr.msk.f32.vlgmr.msra.gmra.mrb[2].mxu0 %vm126_vm2, %v4935_v20  ;;  %v2618_v10 = vmul.f32 %v2612_v49, %v5445_v58  ;;  %v2783_v21 = vmul.f32 %v2781_v54, %v5476_v33 }
 0x367   :  { %2626 = vmatpush1.msra.mxu0 %v2616_v22  ;;  %2689 = vmatprep.mubr.f32.mxu0 %v5091_v2 }
 0x368   :  { %2696 = vmatprep.subr.mxu1 %v2619_v50  ;;  %v2776_v62 = vpop.permute.xlu1 %2775 }
 0x369   :  { %v2780_v14 = vsel %vm1176_vm6, %v2774_v9, %v2776_v62 }
 0x36a   :  { %v2784_v43 = vmul.f32 %v2780_v14, %v5460_v13  ;;  %4937 = vmatmul.mubr.msk.f32.vlgmr.msra.gmra.mrb[2].mxu1 %vm126_vm2, %v4935_v20 }
 0x36b   :  { %2697 = vmatpush1.msra.mxu1 %v2618_v10  ;;  %2760 = vmatprep.mubr.f32.mxu1 %v5091_v2 }
 0x36c   :  { %v2778_v12 = vpop.permute.xlu1 %2777  ;;  %2792 = vmatprep.subr.mxu0 %v2784_v43 }
 0x36d   :  { %v2782_v8 = vsel %vm1176_vm6, %v2778_v12, %v2772_v0  ;;  %v2779_v9 = vsel %vm1176_vm6, %v2776_v62, %v2778_v12  ;;  %v2948_v0 = vsel %vm1367_vm7, %v2939_v52, %v2941_v11  ;;  %v3106_v62 = vpop.permute.xlu0 %3105 }
 0x36e   :  { %v2786_v51 = vmul.f32 %v2782_v8, %v5473_v32  ;;  %4939 = vmatmul.mubr.msk.f32.vlgmr.msra.gmra.mrb[2].mxu0 %vm126_vm2, %v4938_v1  ;;  %v2785_v30 = vmul.f32 %v2779_v9, %v5479_v34  ;;  %v2950_v39 = vmul.f32 %v2948_v0, %v5511_v60  ;;  %v3115_v43 = vsel %vm1558_vm8, %v3106_v62, %v3108_v63 }
 0x36f   :  { %2793 = vmatpush1.msra.mxu0 %v2783_v21  ;;  %2856 = vmatprep.mubr.f32.mxu0 %v5091_v2  ;;  %v3117_v21 = vmul.f32 %v3115_v43, %v5546_v4  ;;  %v3307_v43 = vld [vmem:[%s6081_s7] sm:$0xff] }
 0x370   :  { %2863 = vmatprep.subr.mxu1 %v2786_v51  ;;  %v2943_v26 = vpop.permute.xlu1 %2942 }
 0x371   :  { %v2947_v40 = vsel %vm1367_vm7, %v2941_v11, %v2943_v26 }
 0x372   :  { %v2951_v20 = vmul.f32 %v2947_v40, %v5495_v47  ;;  %4940 = vmatmul.mubr.msk.f32.vlgmr.msra.gmra.mrb[2].mxu1 %vm126_vm2, %v4938_v1  ;;  %v4944_v1 = vld [vmem:[%s6080_s5 + $0x38] sm:$0xff] }
 0x373   :  { %2864 = vmatpush1.msra.mxu1 %v2785_v30  ;;  %2927 = vmatprep.mubr.f32.mxu1 %v5091_v2 }
 0x374   :  { %v2945_v22 = vpop.permute.xlu1 %2944  ;;  %2959 = vmatprep.subr.mxu0 %v2951_v20 }
 0x375   :  { %v2949_v49 = vsel %vm1367_vm7, %v2945_v22, %v2939_v52  ;;  %v2946_v11 = vsel %vm1367_vm7, %v2943_v26, %v2945_v22 }
 0x376   :  { %v2953_v50 = vmul.f32 %v2949_v49, %v5508_v59  ;;  %4942 = vmatmul.mubr.msk.f32.vlgmr.msra.gmra.mrb[2].mxu0 %vm126_vm2, %v4941_v41  ;;  %v2952_v14 = vmul.f32 %v2946_v11, %v5514_v61 }
 0x377   :  { %2960 = vmatpush1.msra.mxu0 %v2950_v39  ;;  %3023 = vmatprep.mubr.f32.mxu0 %v5091_v2 }
 0x378   :  { %3030 = vmatprep.subr.mxu1 %v2953_v50  ;;  %v3110_v10 = vpop.permute.xlu1 %3109 }
 0x379   :  { %v3114_v54 = vsel %vm1558_vm8, %v3108_v63, %v3110_v10  ;;  %v4947_v63 = vld [vmem:[%s6080_s5 + $0x40] sm:$0xff] }
 0x37a   :  { %v3118_v52 = vmul.f32 %v3114_v54, %v5530_v24  ;;  %4943 = vmatmul.mubr.msk.f32.vlgmr.msra.gmra.mrb[2].mxu1 %vm126_vm2, %v4941_v41 }
 0x37b   :  { %3031 = vmatpush1.msra.mxu1 %v2952_v14  ;;  %3094 = vmatprep.mubr.f32.mxu1 %v5091_v2 }
 0x37c   :  { %v3112_v12 = vpop.permute.xlu1 %3111  ;;  %3126 = vmatprep.subr.mxu0 %v3118_v52 }
 0x37d   :  { %v3116_v8 = vsel %vm1558_vm8, %v3112_v12, %v3106_v62  ;;  %v3113_v9 = vsel %vm1558_vm8, %v3110_v10, %v3112_v12 }
 0x37e   :  { %v3120_v51 = vmul.f32 %v3116_v8, %v5543_v44  ;;  %4945 = vmatmul.mubr.msk.f32.vlgmr.msra.gmra.mrb[2].mxu0 %vm126_vm2, %v4944_v1  ;;  %v3119_v26 = vmul.f32 %v3113_v9, %v5549_v46 }
 0x37f   :  { %3127 = vmatpush1.msra.mxu0 %v3117_v21  ;;  %3190 = vmatprep.mubr.f32.mxu0 %v5091_v2 }
 0x380   :  { %3197 = vmatprep.subr.mxu1 %v3120_v51 }
 0x382   :  { %4946 = vmatmul.mubr.msk.f32.vlgmr.msra.gmra.mrb[2].mxu1 %vm126_vm2, %v4944_v1 }
 0x383   :  { %3198 = vmatpush1.msra.mxu1 %v3119_v26  ;;  %3261 = vmatprep.mubr.f32.mxu1 %v5091_v2 }
 0x386   :  { %4948 = vmatmul.mubr.msk.f32.vlgmr.msra.gmra.mrb[2].mxu0 %vm126_vm2, %v4947_v63 }
 0x387   :  { %3423 = vmatprep.mubr.f32.mxu0 %v5091_v2 }
 0x38a   :  { %4949 = vmatmul.mubr.msk.f32.vlgmr.msra.gmra.mrb[2].mxu1 %vm126_vm2, %v4947_v63 }
 0x38b   :  { %3494 = vmatprep.mubr.f32.mxu1 %v5091_v2 }
 0x459   :  { %v3192_v30 = vpop.f32.mrb[2].mxu0 }
 0x45a   :  { %v3278_v40 = vmul.f32 %v3192_v30, %v3192_v30  ;;  %v3194_v0 = vpop.f32.mrb[3].mxu0 }
 0x45b   :  { %v3272_v20 = vadd.f32 %v3194_v0, %v3192_v30  ;;  %v3279_v41 = vmul.f32 %v3194_v0, %v3194_v0 }
 0x45d   :  { %v3263_v22 = vpop.f32.mrb[2].mxu1  ;;  %v3282_v39 = vadd.f32 %v3279_v41, %v3278_v40  ;;  %v3292_v41 = vld [vmem:[%s6082_s6] sm:$0xff] }
 0x45e   :  { %v3280_v49 = vmul.f32 %v3263_v22, %v3263_v22  ;;  %v3265_v11 = vpop.f32.mrb[3].mxu1  ;;  %v3273_v50 = vadd.f32 %v3272_v20, %v3263_v22 }
 0x45f   :  { %v3281_v62 = vmul.f32 %v3265_v11, %v3265_v11 }
 0x460   :  { %v3274_v10 = vadd.f32 %v3273_v50, %v3265_v11  ;;  %v3283_v14 = vadd.f32 %v3282_v39, %v3280_v49 }
 0x462   :  { %3275 = vadd.xlane.f32.xlu0 %v3274_v10  ;;  %v3284_v54 = vadd.f32 %v3283_v14, %v3281_v62 }
 0x464   :  { %3285 = vadd.xlane.f32.xlu1 %v3284_v54 }
 0x475   :  { %3310 = vperm.xlu1 %5084, %v3307_v43  }
 0x4ef   :  { %v3276_v52 = vpop.xlane.xlu0 %3275 }
 0x4f0   :  { %v3277_v1 = vmul.f32 0.001953125, %v3276_v52 }
 0x4f1   :  { %v3286_v12 = vpop.xlane.xlu1 %3285 }
 0x4f2   :  { %v3287_v21 = vmul.f32 0.001953125, %v3286_v12  ;;  %v3288_v8 = vmul.f32 %v3277_v1, %v3277_v1  ;;  %v3294_v9 = vsub.f32 %v3192_v30, %v3277_v1  ;;  %v3295_v51 = vsub.f32 %v3194_v0, %v3277_v1 }
 0x4f3   :  { %v3296_v26 = vsub.f32 %v3263_v22, %v3277_v1  ;;  %v3297_v63 = vsub.f32 %v3265_v11, %v3277_v1 }
 0x4f4   :  { %v3289_v40 = vsub.f32 %v3287_v21, %v3288_v8 }
 0x4f5   :  { %v3311_v43 = vpop.permute.xlu1 %3310 }
 0x4f6   :  { %v3290_v20 = vadd.f32 1e-05, %v3289_v40 }
 0x4f8   :  { %5087 = vrsqrt.f32 %v3290_v20 }
 0x502   :  { %v5088_v39 = vpop.eup %5087 }
 0x503   :  { %v3293_v49 = vmul.f32 %v5088_v39, %v3292_v41 }
 0x505   :  { %3300 = vperm.xlu0 %5083, %v3293_v49  }
 0x584   :  { %v3301_v50 = vpop.permute.xlu0 %3300 }
 0x585   :  { %v3303_v62 = vmul.f32 %v3301_v50, %v3294_v9  ;;  %v3304_v10 = vmul.f32 %v3301_v50, %v3295_v51  ;;  %v3305_v14 = vmul.f32 %v3301_v50, %v3296_v26  ;;  %v3306_v54 = vmul.f32 %v3301_v50, %v3297_v63 }
 0x587   :  { %v3313_v30 = vadd.f32 %v3311_v43, %v3303_v62  ;;  %v3314_v0 = vadd.f32 %v3311_v43, %v3304_v10  ;;  %v3315_v22 = vadd.f32 %v3311_v43, %v3305_v14  ;;  %v3316_v11 = vadd.f32 %v3311_v43, %v3306_v54 }
 0x589   :  { %v5827_v52 = vmax.f32 %v3313_v30, 0.0  ;;  %v5829_v1 = vmax.f32 %v3314_v0, 0.0  ;;  %v5835_v12 = vmax.f32 %v3315_v22, 0.0  ;;  %v5837_v21 = vmax.f32 %v3316_v11, 0.0 }
 0x58b   :  { %3340 = vrot.lane.b32.xlu1 %v5829_v1, %s5092_s21  ;;  %3338 = vrot.lane.b32.xlu0 %v5827_v52, %s5092_s21 }
 0x58f   :  { %3342 = vrot.lane.b32.xlu1 %v5835_v12, %s5092_s21  ;;  %3344 = vrot.lane.b32.xlu0 %v5837_v21, %s5092_s21 }
 0x593   :  { %3323 = vrot.lane.b32.xlu1 %v5829_v1, %s5093_s26  ;;  %3321 = vrot.lane.b32.xlu0 %v5827_v52, %s5093_s26 }
 0x597   :  { %3325 = vrot.lane.b32.xlu1 %v5835_v12, %s5093_s26  ;;  %3327 = vrot.lane.b32.xlu0 %v5837_v21, %s5093_s26 }
 0x59b   :  { %3648 = vrot.lane.b32.xlu1 %v5829_v1, %s5094_s0  ;;  %3646 = vrot.lane.b32.xlu0 %v5827_v52, %s5094_s0 }
 0x59f   :  { %3650 = vrot.lane.b32.xlu1 %v5835_v12, %s5094_s0  ;;  %3652 = vrot.lane.b32.xlu0 %v5837_v21, %s5094_s0 }
 0x5a3   :  { %3815 = vrot.lane.b32.xlu1 %v5829_v1, %s5095_s27  ;;  %3813 = vrot.lane.b32.xlu0 %v5827_v52, %s5095_s27 }
 0x5a7   :  { %3817 = vrot.lane.b32.xlu1 %v5835_v12, %s5095_s27  ;;  %3819 = vrot.lane.b32.xlu0 %v5837_v21, %s5095_s27 }
 0x5ab   :  { %4139 = vrot.lane.b32.xlu1 %v5835_v12, %s5096_s28  ;;  %4137 = vrot.lane.b32.xlu0 %v5829_v1, %s5096_s28 }
 0x5af   :  { %4141 = vrot.lane.b32.xlu1 %v5837_v21, %s5096_s28  ;;  %4135 = vrot.lane.b32.xlu0 %v5827_v52, %s5096_s28 }
 0x5b3   :  { %4306 = vrot.lane.b32.xlu1 %v5835_v12, %s5097_s29  ;;  %4304 = vrot.lane.b32.xlu0 %v5829_v1, %s5097_s29 }
 0x5b7   :  { %4308 = vrot.lane.b32.xlu1 %v5837_v21, %s5097_s29  ;;  %4302 = vrot.lane.b32.xlu0 %v5827_v52, %s5097_s29 }
 0x5bb   :  { %4473 = vrot.lane.b32.xlu1 %v5835_v12, %s5098_s30  ;;  %4471 = vrot.lane.b32.xlu0 %v5829_v1, %s5098_s30 }
 0x5bf   :  { %4475 = vrot.lane.b32.xlu1 %v5837_v21, %s5098_s30  ;;  %4469 = vrot.lane.b32.xlu0 %v5827_v52, %s5098_s30 }
 0x5c3   :  { %4640 = vrot.lane.b32.xlu1 %v5835_v12, %s5099_s12  ;;  %4638 = vrot.lane.b32.xlu0 %v5829_v1, %s5099_s12 }
 0x5c7   :  { %4642 = vrot.lane.b32.xlu1 %v5837_v21, %s5099_s12  ;;  %4636 = vrot.lane.b32.xlu0 %v5827_v52, %s5099_s12 }
 0x5fd   :  { %v3341_v8 = vpop.permute.xlu1 %3340  ;;  %v3339_v9 = vpop.permute.xlu0 %3338 }
 0x5fe   :  { %v3348_v51 = vsel %vm92_vm0, %v3339_v9, %v3341_v8 }
 0x5ff   :  { %v3351_v26 = vmul.f32 %v3348_v51, %v5274_v16  ;;  %v4950_v16 = vld [vmem:[%s6083_s8 + $0x8] sm:$0xff] }
 0x601   :  { %v3343_v63 = vpop.permute.xlu1 %3342  ;;  %3359 = vmatprep.subr.mxu0 %v3351_v26  ;;  %v3345_v40 = vpop.permute.xlu0 %3344 }
 0x602   :  { %v3347_v20 = vsel %vm92_vm0, %v3341_v8, %v3343_v63  ;;  %v3346_v41 = vsel %vm92_vm0, %v3343_v63, %v3345_v40  ;;  %v3349_v39 = vsel %vm92_vm0, %v3345_v40, %v3339_v9  ;;  %v3337_v8 = vld [vmem:[%s6083_s8] sm:$0xff] }
 0x603   :  { %v3352_v49 = vmul.f32 %v3347_v20, %v5277_v17  ;;  %v3350_v50 = vmul.f32 %v3349_v39, %v5283_v19  ;;  %v3353_v62 = vmul.f32 %v3346_v41, %v5271_v15 }
 0x605   :  { %v3324_v10 = vpop.permute.xlu1 %3323  ;;  %3360 = vmatpush1.msra.mxu0 %v3350_v50  ;;  %3430 = vmatprep.subr.mxu1 %v3353_v62  ;;  %v3322_v14 = vpop.permute.xlu0 %3321 }
 0x606   :  { %v3331_v54 = vsel %vm52_vm1, %v3322_v14, %v3324_v10  ;;  %4951 = vmatmul.mubr.msk.f32.vlgmr.msra.gmra.mrb[4].mxu0 %vm126_vm2, %v4950_v16  ;;  %3431 = vmatpush1.msra.mxu1 %v3352_v49  ;;  %v4955_v49 = vld [vmem:[%s6083_s8 + $0x10] sm:$0xff] }
 0x607   :  { %v3334_v17 = vmul.f32 %v3331_v54, %v5297_v28  ;;  %4952 = vmatmul.mubr.msk.f32.vlgmr.msra.gmra.mrb[4].mxu1 %vm126_vm2, %v4950_v16  ;;  %3568 = vmatprep.mubr.f32.mxu0 %v5091_v2 }
 0x608   :  { %3639 = vmatprep.mubr.f32.mxu1 %v5091_v2 }
 0x609   :  { %v3326_v15 = vpop.permute.xlu1 %3325  ;;  %3504 = vmatprep.subr.mxu0 %v3334_v17  ;;  %v3328_v19 = vpop.permute.xlu0 %3327 }
 0x60a   :  { %v3330_v43 = vsel %vm52_vm1, %v3324_v10, %v3326_v15  ;;  %v3329_v30 = vsel %vm52_vm1, %v3326_v15, %v3328_v19  ;;  %v3332_v0 = vsel %vm52_vm1, %v3328_v19, %v3322_v14  ;;  %v4958_v19 = vld [vmem:[%s6083_s8 + $0x18] sm:$0xff] }
 0x60b   :  { %v3335_v28 = vmul.f32 %v3330_v43, %v5307_v35  ;;  %v3333_v22 = vmul.f32 %v3332_v0, %v5313_v37  ;;  %v3336_v11 = vmul.f32 %v3329_v30, %v5316_v38  ;;  %v3981_v0 = vmul.f32 %v5829_v1, %v5378_v23 }
 0x60c   :  { %v3982_v23 = vmul.f32 %v5835_v12, %v5406_v36  ;;  %v4961_v12 = vld [vmem:[%s6083_s8 + $0x20] sm:$0xff] }
 0x60d   :  { %v3649_v9 = vpop.permute.xlu1 %3648  ;;  %3505 = vmatpush1.msra.mxu0 %v3333_v22  ;;  %3575 = vmatprep.subr.mxu1 %v3336_v11  ;;  %v3647_v51 = vpop.permute.xlu0 %3646 }
 0x60e   :  { %v3656_v26 = vsel %vm425_vm3, %v3647_v51, %v3649_v9  ;;  %4953 = vmatmul.mubr.msk.f32.vlgmr.msra.gmra.mrb[4].mxu0 %vm126_vm2, %v3337_v8  ;;  %3576 = vmatpush1.msra.mxu1 %v3335_v28 }
 0x60f   :  { %v3659_v35 = vmul.f32 %v3656_v26, %v5334_v48  ;;  %4954 = vmatmul.mubr.msk.f32.vlgmr.msra.gmra.mrb[4].mxu1 %vm126_vm2, %v3337_v8  ;;  %3731 = vmatprep.mubr.f32.mxu0 %v5091_v2 }
 0x610   :  { %3802 = vmatprep.mubr.f32.mxu1 %v5091_v2 }
 0x611   :  { %v3651_v37 = vpop.permute.xlu1 %3650  ;;  %3667 = vmatprep.subr.mxu0 %v3659_v35  ;;  %v3653_v38 = vpop.permute.xlu0 %3652 }
 0x612   :  { %v3655_v63 = vsel %vm425_vm3, %v3649_v9, %v3651_v37  ;;  %v3654_v40 = vsel %vm425_vm3, %v3651_v37, %v3653_v38  ;;  %v3657_v20 = vsel %vm425_vm3, %v3653_v38, %v3647_v51  ;;  %v4964_v38 = vld [vmem:[%s6083_s8 + $0x28] sm:$0xff] }
 0x613   :  { %v3660_v48 = vmul.f32 %v3655_v63, %v5342_v53  ;;  %v3658_v41 = vmul.f32 %v3657_v20, %v5348_v55  ;;  %v3661_v39 = vmul.f32 %v3654_v40, %v5351_v56 }
 0x615   :  { %v3816_v50 = vpop.permute.xlu1 %3815  ;;  %3668 = vmatpush1.msra.mxu0 %v3658_v41  ;;  %3738 = vmatprep.subr.mxu1 %v3661_v39  ;;  %v3814_v62 = vpop.permute.xlu0 %3813 }
 0x616   :  { %v3823_v16 = vsel %vm616_vm4, %v3814_v62, %v3816_v50  ;;  %4956 = vmatmul.mubr.msk.f32.vlgmr.msra.gmra.mrb[4].mxu0 %vm126_vm2, %v4955_v49  ;;  %3739 = vmatpush1.msra.mxu1 %v3660_v48 }
 0x617   :  { %v3826_v53 = vmul.f32 %v3823_v16, %v5372_v18  ;;  %4957 = vmatmul.mubr.msk.f32.vlgmr.msra.gmra.mrb[4].mxu1 %vm126_vm2, %v4955_v49  ;;  %3898 = vmatprep.mubr.f32.mxu0 %v5091_v2 }
 0x618   :  { %3969 = vmatprep.mubr.f32.mxu1 %v5091_v2 }
 0x619   :  { %v3818_v55 = vpop.permute.xlu1 %3817  ;;  %3834 = vmatprep.subr.mxu0 %v3826_v53  ;;  %v3820_v56 = vpop.permute.xlu0 %3819 }
 0x61a   :  { %v3822_v10 = vsel %vm616_vm4, %v3816_v50, %v3818_v55  ;;  %v3821_v14 = vsel %vm616_vm4, %v3818_v55, %v3820_v56  ;;  %v3824_v54 = vsel %vm616_vm4, %v3820_v56, %v3814_v62  ;;  %v4967_v62 = vld [vmem:[%s6083_s8 + $0x30] sm:$0xff] }
 0x61b   :  { %v3827_v18 = vmul.f32 %v3822_v10, %v5383_v25  ;;  %v3825_v17 = vmul.f32 %v3824_v54, %v5389_v27  ;;  %v3828_v15 = vmul.f32 %v3821_v14, %v5392_v29  ;;  %v3980_v25 = vmul.f32 %v5827_v52, %v5415_v42 }
 0x61c   :  { %v3983_v27 = vmul.f32 %v5837_v21, %v5400_v31 }
 0x61d   :  { %v4140_v43 = vpop.permute.xlu1 %4139  ;;  %3835 = vmatpush1.msra.mxu0 %v3825_v17  ;;  %3905 = vmatprep.subr.mxu1 %v3828_v15  ;;  %v4138_v30 = vpop.permute.xlu0 %4137  ;;  %v4970_v17 = vld [vmem:[%s6083_s8 + $0x38] sm:$0xff] }
 0x61e   :  { %v4144_v28 = vsel %vm985_vm5, %v4138_v30, %v4140_v43  ;;  %4959 = vmatmul.mubr.msk.f32.vlgmr.msra.gmra.mrb[4].mxu0 %vm126_vm2, %v4958_v19  ;;  %3906 = vmatpush1.msra.mxu1 %v3827_v18 }
 0x61f   :  { %v4148_v29 = vmul.f32 %v4144_v28, %v5421_v45  ;;  %3989 = vmatprep.subr.mxu0 %v3981_v0  ;;  %4960 = vmatmul.mubr.msk.f32.vlgmr.msra.gmra.mrb[4].mxu1 %vm126_vm2, %v4958_v19 }
 0x620   :  { %3990 = vmatpush1.msra.mxu0 %v3980_v25  ;;  %4060 = vmatprep.subr.mxu1 %v3983_v27 }
 0x621   :  { %4061 = vmatpush1.msra.mxu1 %v3982_v23  ;;  %v4142_v1 = vpop.permute.xlu1 %4141  ;;  %v4136_v22 = vpop.permute.xlu0 %4135  ;;  %4156 = vmatprep.subr.mxu0 %v4148_v29 }
 0x622   :  { %v4145_v42 = vsel %vm985_vm5, %v4136_v22, %v4138_v30  ;;  %v4146_v31 = vsel %vm985_vm5, %v4142_v1, %v4136_v22  ;;  %4053 = vmatprep.mubr.f32.mxu0 %v5091_v2  ;;  %4124 = vmatprep.mubr.f32.mxu1 %v5091_v2  ;;  %v4143_v45 = vsel %vm985_vm5, %v4140_v43, %v4142_v1  ;;  %v4838_v22 = vld [vmem:[%s6084_s10] sm:$0xff] }
 0x623   :  { %v4147_v36 = vmul.f32 %v4145_v42, %v5442_v3  ;;  %v4150_v52 = vmul.f32 %v4146_v31, %v5438_v57  ;;  %v4149_v8 = vmul.f32 %v4143_v45, %v5445_v58 }
 0x625   :  { %v4307_v21 = vpop.permute.xlu1 %4306  ;;  %4227 = vmatprep.subr.mxu1 %v4150_v52  ;;  %v4305_v11 = vpop.permute.xlu0 %4304 }
 0x626   :  { %v4311_v9 = vsel %vm1176_vm6, %v4305_v11, %v4307_v21  ;;  %4962 = vmatmul.mubr.msk.f32.vlgmr.msra.gmra.mrb[4].mxu0 %vm126_vm2, %v4961_v12 }
 0x627   :  { %v4315_v51 = vmul.f32 %v4311_v9, %v5460_v13  ;;  %4157 = vmatpush1.msra.mxu0 %v4147_v36  ;;  %4963 = vmatmul.mubr.msk.f32.vlgmr.msra.gmra.mrb[4].mxu1 %vm126_vm2, %v4961_v12 }
 0x628   :  { %4228 = vmatpush1.msra.mxu1 %v4149_v8  ;;  %4220 = vmatprep.mubr.f32.mxu0 %v5091_v2 }
 0x629   :  { %v4309_v57 = vpop.permute.xlu1 %4308  ;;  %v4303_v3 = vpop.permute.xlu0 %4302  ;;  %4323 = vmatprep.subr.mxu0 %v4315_v51  ;;  %4291 = vmatprep.mubr.f32.mxu1 %v5091_v2 }
 0x62a   :  { %v4312_v58 = vsel %vm1176_vm6, %v4303_v3, %v4305_v11  ;;  %v4313_v26 = vsel %vm1176_vm6, %v4309_v57, %v4303_v3  ;;  %v4310_v13 = vsel %vm1176_vm6, %v4307_v21, %v4309_v57  ;;  %v4823_v57 = vld [vmem:[%s6085_s9] sm:$0xff] }
 0x62b   :  { %v4314_v35 = vmul.f32 %v4312_v58, %v5476_v33  ;;  %v4317_v37 = vmul.f32 %v4313_v26, %v5473_v32  ;;  %v4316_v20 = vmul.f32 %v4310_v13, %v5479_v34  ;;  %v5101_v26 = vmov 1966171168  }
 0x62c   :  { %v4859_v13 = vunpack.c.l.s4 %v5101_v26 }
 0x62d   :  { %v4474_v63 = vpop.permute.xlu1 %4473  ;;  %4394 = vmatprep.subr.mxu1 %v4317_v37  ;;  %v4472_v40 = vpop.permute.xlu0 %4471 }
 0x62e   :  { %v4478_v48 = vsel %vm1367_vm7, %v4472_v40, %v4474_v63  ;;  %4965 = vmatmul.mubr.msk.f32.vlgmr.msra.gmra.mrb[4].mxu0 %vm126_vm2, %v4964_v38 }
 0x62f   :  { %v4482_v41 = vmul.f32 %v4478_v48, %v5495_v47  ;;  %4324 = vmatpush1.msra.mxu0 %v4314_v35  ;;  %4966 = vmatmul.mubr.msk.f32.vlgmr.msra.gmra.mrb[4].mxu1 %vm126_vm2, %v4964_v38  ;;  %v4860_v35 = vunpack.c.0.s8 %v4859_v13 }
 0x630   :  { %4395 = vmatpush1.msra.mxu1 %v4316_v20  ;;  %4387 = vmatprep.mubr.f32.mxu0 %v5091_v2 }
 0x631   :  { %v4476_v32 = vpop.permute.xlu1 %4475  ;;  %v4470_v33 = vpop.permute.xlu0 %4469  ;;  %4490 = vmatprep.subr.mxu0 %v4482_v41  ;;  %4458 = vmatprep.mubr.f32.mxu1 %v5091_v2 }
 0x632   :  { %v4479_v34 = vsel %vm1367_vm7, %v4470_v33, %v4472_v40  ;;  %v4480_v39 = vsel %vm1367_vm7, %v4476_v32, %v4470_v33  ;;  %v4477_v47 = vsel %vm1367_vm7, %v4474_v63, %v4476_v32 }
 0x633   :  { %v4481_v49 = vmul.f32 %v4479_v34, %v5511_v60  ;;  %v4484_v50 = vmul.f32 %v4480_v39, %v5508_v59  ;;  %v4483_v55 = vmul.f32 %v4477_v47, %v5514_v61  ;;  %v4863_v39 = vsub.s32 %v4860_v35, %v5249_v6 }
 0x635   :  { %v4641_v16 = vpop.permute.xlu1 %4640  ;;  %4561 = vmatprep.subr.mxu1 %v4484_v50  ;;  %v4639_v53 = vpop.permute.xlu0 %4638 }
 0x636   :  { %v4645_v56 = vsel %vm1558_vm8, %v4639_v53, %v4641_v16  ;;  %4968 = vmatmul.mubr.msk.f32.vlgmr.msra.gmra.mrb[4].mxu0 %vm126_vm2, %v4967_v62 }
 0x637   :  { %v4649_v10 = vmul.f32 %v4645_v56, %v5530_v24  ;;  %4491 = vmatpush1.msra.mxu0 %v4481_v49  ;;  %4969 = vmatmul.mubr.msk.f32.vlgmr.msra.gmra.mrb[4].mxu1 %vm126_vm2, %v4967_v62 }
 0x638   :  { %4562 = vmatpush1.msra.mxu1 %v4483_v55  ;;  %4554 = vmatprep.mubr.f32.mxu0 %v5091_v2 }
 0x639   :  { %v4643_v59 = vpop.permute.xlu1 %4642  ;;  %v4637_v60 = vpop.permute.xlu0 %4636  ;;  %4657 = vmatprep.subr.mxu0 %v4649_v10  ;;  %4625 = vmatprep.mubr.f32.mxu1 %v5091_v2 }
 0x63a   :  { %v4646_v61 = vsel %vm1558_vm8, %v4637_v60, %v4639_v53  ;;  %v4647_v14 = vsel %vm1558_vm8, %v4643_v59, %v4637_v60  ;;  %v4644_v24 = vsel %vm1558_vm8, %v4641_v16, %v4643_v59 }
 0x63b   :  { %v4648_v54 = vmul.f32 %v4646_v61, %v5546_v4  ;;  %v4651_v18 = vmul.f32 %v4647_v14, %v5543_v44  ;;  %v4650_v15 = vmul.f32 %v4644_v24, %v5549_v46 }
 0x63d   :  { %4728 = vmatprep.subr.mxu1 %v4651_v18 }
 0x63e   :  { %4971 = vmatmul.mubr.msk.f32.vlgmr.msra.gmra.mrb[4].mxu0 %vm126_vm2, %v4970_v17 }
 0x63f   :  { %4658 = vmatpush1.msra.mxu0 %v4648_v54  ;;  %4972 = vmatmul.mubr.msk.f32.vlgmr.msra.gmra.mrb[4].mxu1 %vm126_vm2, %v4970_v17 }
 0x640   :  { %4729 = vmatpush1.msra.mxu1 %v4650_v15  ;;  %4721 = vmatprep.mubr.f32.mxu0 %v5091_v2 }
 0x641   :  { %4792 = vmatprep.mubr.f32.mxu1 %v5091_v2 }
 0x646   :  { %4974 = vmatmul.mubr.msk.f32.vlgmr.msra.gmra.mrb[4].mxu0 %vm126_vm2, %v4973_v7 }
 0x647   :  { %4975 = vmatmul.mubr.msk.f32.vlgmr.msra.gmra.mrb[4].mxu1 %vm126_vm2, %v4973_v7 }
 0x719   :  { %v4723_v44 = vpop.f32.mrb[4].mxu0 }
 0x71a   :  { %v4809_v4 = vmul.f32 %v4723_v44, %v4723_v44  ;;  %v4725_v46 = vpop.f32.mrb[5].mxu0  ;;  %v4794_v19 = vpop.f32.mrb[4].mxu1 }
 0x71b   :  { %v4803_v43 = vadd.f32 %v4725_v46, %v4723_v44  ;;  %v4810_v30 = vmul.f32 %v4725_v46, %v4725_v46  ;;  %v4796_v0 = vpop.f32.mrb[5].mxu1  ;;  %v4811_v27 = vmul.f32 %v4794_v19, %v4794_v19 }
 0x71c   :  { %v4812_v23 = vmul.f32 %v4796_v0, %v4796_v0 }
 0x71d   :  { %v4813_v28 = vadd.f32 %v4810_v30, %v4809_v4  ;;  %v4804_v25 = vadd.f32 %v4803_v43, %v4794_v19 }
 0x71f   :  { %v4814_v29 = vadd.f32 %v4813_v28, %v4811_v27  ;;  %v4805_v2 = vadd.f32 %v4804_v25, %v4796_v0 }
 0x721   :  { %v4815_v1 = vadd.f32 %v4814_v29, %v4812_v23  ;;  %4806 = vadd.xlane.f32.xlu0 %v4805_v2 }
 0x723   :  { %4816 = vadd.xlane.f32.xlu1 %v4815_v1 }
 0x734   :  { %4841 = vperm.xlu1 %5084, %v4838_v22  }
 0x7ae   :  { %v4807_v42 = vpop.xlane.xlu0 %4806 }
 0x7af   :  { %v4808_v31 = vmul.f32 0.001953125, %v4807_v42 }
 0x7b0   :  { %v4817_v45 = vpop.xlane.xlu1 %4816 }
 0x7b1   :  { %v4818_v36 = vmul.f32 0.001953125, %v4817_v45  ;;  %v4819_v52 = vmul.f32 %v4808_v31, %v4808_v31  ;;  %v4825_v12 = vsub.f32 %v4723_v44, %v4808_v31  ;;  %v4826_v21 = vsub.f32 %v4725_v46, %v4808_v31 }
 0x7b2   :  { %v4827_v11 = vsub.f32 %v4794_v19, %v4808_v31  ;;  %v4828_v8 = vsub.f32 %v4796_v0, %v4808_v31 }
 0x7b3   :  { %v4820_v9 = vsub.f32 %v4818_v36, %v4819_v52 }
 0x7b4   :  { %v4842_v48 = vpop.permute.xlu1 %4841 }
 0x7b5   :  { %v4821_v51 = vadd.f32 1e-05, %v4820_v9 }
 0x7b7   :  { %5089 = vrsqrt.f32 %v4821_v51 }
 0x7c1   :  { %v5090_v3 = vpop.eup %5089 }
 0x7c2   :  { %v4824_v58 = vmul.f32 %v5090_v3, %v4823_v57 }
 0x7c4   :  { %4831 = vperm.xlu0 %5083, %v4824_v58  }
 0x843   :  { %v4832_v37 = vpop.permute.xlu0 %4831 }
 0x844   :  { %v4834_v38 = vmul.f32 %v4832_v37, %v4825_v12  ;;  %v4835_v63 = vmul.f32 %v4832_v37, %v4826_v21  ;;  %v4836_v40 = vmul.f32 %v4832_v37, %v4827_v11  ;;  %v4837_v20 = vmul.f32 %v4832_v37, %v4828_v8 }
 0x846   :  { %v4844_v41 = vadd.f32 %v4842_v48, %v4834_v38  ;;  %v4845_v32 = vadd.f32 %v4842_v48, %v4835_v63  ;;  %v4846_v33 = vadd.f32 %v4842_v48, %v4836_v40  ;;  %v4847_v34 = vadd.f32 %v4842_v48, %v4837_v20 }
 0x848   :  { %v4848_v47 = vmax.f32 %v4844_v41, 0.0  ;;  %v4849_v49 = vmax.f32 %v4845_v32, 0.0  ;;  %v4850_v50 = vmax.f32 %v4846_v33, 0.0  ;;  %v4851_v62 = vmax.f32 %v4847_v34, 0.0 }
 0x84a   :  { %v4856_v16 = vcombine.low %v4848_v47, %v4849_v49  ;;  %v4857_v53 = vcombine.low %v4850_v50, %v4851_v62 }
 0x84c   :  { %v4864_v55 = vrot.slane %v4856_v16, %v4863_v39  ;;  %v4871_v56 = vrot.slane %v4857_v53, %v4863_v39 }
 0x84e   :  { %v4872_v10 = vcombine.low %v4864_v55, %v4871_v56 }
 0x850   :  { %v4879_v59 = vrot.slane %v4872_v10, %v4863_v39 }
 0x852   :  { %4885 = vst.msk [vmem:[%s6086_s11] sm:$0xf] %vm4883_vm9, %v4879_v59 }

</bundles_post_ra>
